<compile_context>
chip_gen: v7x
topology: tpu7x:2x2x1
jax: 0.10.0
libtpu: 0.0.40
codegen_flags: <defaults>
</compile_context>

<pallas_src>
import math
import functools

import jax
import jax.numpy as jnp
from jax import lax
from jax.experimental import pallas as pl
from jax.experimental.pallas import tpu as pltpu


# --------------------------------------------------------------------------
# small math helpers (f32, VPU-side)
# --------------------------------------------------------------------------
def _layernorm(x, eps=1e-6):
    # LayerNorm(elementwise_affine=False), stats over last dim in f32.
    mean = jnp.mean(x, axis=-1, keepdims=True)
    var = jnp.mean((x - mean) ** 2, axis=-1, keepdims=True)
    return (x - mean) * lax.rsqrt(var + eps)


def _gelu_tanh(x):
    # nn.GELU(approximate='tanh')
    c = math.sqrt(2.0 / math.pi)
    return 0.5 * x * (1.0 + jnp.tanh(c * (x + 0.044715 * x * x * x)))


# --------------------------------------------------------------------------
# Kernel A: LN1 + modulate + qkv projection, emits head-major Q/K/V
# --------------------------------------------------------------------------
def qkv_proj_kernel(x_ref, mod_ref, w_qkv_ref, b_qkv_ref,
                    q_ref, k_ref, v_ref, *, num_heads):
    D = x_ref.shape[-1]
    H = num_heads
    Dh = D // H

    x = x_ref[0].astype(jnp.float32)          # (TQ, D)
    mod = mod_ref[0]                          # (1, 6D) f32
    shift_msa = mod[:, 0 * D:1 * D]
    scale_msa = mod[:, 1 * D:2 * D]

    xn = _layernorm(x)
    xm = (xn * (1.0 + scale_msa) + shift_msa).astype(w_qkv_ref.dtype)

    # One wide MXU matmul (full K=D, N=3D), single cast of the result.
    qkv = jnp.dot(xm, w_qkv_ref[...], preferred_element_type=jnp.float32)
    qkv = (qkv + b_qkv_ref[...]).astype(q_ref.dtype)          # (TQ, 3D) bf16

    # Scatter once into head-major (H, TQ, Dh) outputs, so Kernel B's hot loop
    # never has to lane-slice misaligned Dh stripes out of a (T, D) tile.
    for h in range(H):
        q_ref[0, h] = qkv[:, 0 * D + h * Dh:0 * D + (h + 1) * Dh]
        k_ref[0, h] = qkv[:, 1 * D + h * Dh:1 * D + (h + 1) * Dh]
        v_ref[0, h] = qkv[:, 2 * D + h * Dh:2 * D + (h + 1) * Dh]


# --------------------------------------------------------------------------
# Kernel B: flash attention (online softmax over KV tiles) + fused projection
#           + residual + LN2/modulate + hidden-chunked MLP + residual
# --------------------------------------------------------------------------
def attn_mlp_kernel(x_ref, mod_ref, q_ref, k_ref, v_ref,
                    w_proj_ref, b_proj_ref,
                    w_fc1_ref, b_fc1_ref,
                    w_fc2_ref, b_fc2_ref,
                    o_ref,
                    m_scr, l_scr, acc_scr,
                    *, num_heads, mlp_chunk, exp_bf16):
    ki = pl.program_id(2)
    nk = pl.num_programs(2)

    D = x_ref.shape[-1]
    H = num_heads
    Dh = D // H
    TQ = q_ref.shape[2]
    scale = 1.0 / math.sqrt(Dh)
    cdt = q_ref.dtype                         # MXU compute dtype (bf16)

    @pl.when(ki == 0)
    def _():
        m_scr[...] = jnp.full(m_scr.shape, -jnp.inf, dtype=jnp.float32)
        l_scr[...] = jnp.zeros(l_scr.shape, dtype=jnp.float32)
        acc_scr[...] = jnp.zeros(acc_scr.shape, dtype=jnp.float32)

    # ---- online softmax over this KV tile, fori_loop over heads ----
    def head_body(h, carry):
        q_h = q_ref[0, h]                     # (TQ, Dh) bf16, aligned block
        k_h = k_ref[0, h]                     # (TK, Dh)
        v_h = v_ref[0, h]                     # (TK, Dh)

        s = lax.dot_general(q_h, k_h, (((1,), (1,)), ((), ())),
                            preferred_element_type=jnp.float32) * scale  # (TQ, TK)

        m_prev = m_scr[h]                                            # (TQ, 1)
        m_new = jnp.maximum(m_prev, jnp.max(s, axis=-1, keepdims=True))
        alpha = jnp.exp(m_prev - m_new)                              # f32
        if exp_bf16:
            p = jnp.exp((s - m_new).astype(jnp.bfloat16))            # bf16 EUP exp
        else:
            p = jnp.exp(s - m_new)                                   # f32 (v5e)

        l_scr[h] = alpha * l_scr[h] + jnp.sum(p, axis=-1, keepdims=True,
                                              dtype=jnp.float32)
        acc_scr[h] = alpha * acc_scr[h] + jnp.dot(
            p.astype(cdt), v_h, preferred_element_type=jnp.float32)
        m_scr[h] = m_new
        return carry

    lax.fori_loop(0, H, head_body, 0, unroll=2)

    # ---- epilogue on the last KV tile ----
    @pl.when(ki == nk - 1)
    def _():
        mod = mod_ref[0]                       # (1, 6D) f32
        gate_msa = mod[:, 2 * D:3 * D]
        shift_mlp = mod[:, 3 * D:4 * D]
        scale_mlp = mod[:, 4 * D:5 * D]
        gate_mlp = mod[:, 5 * D:6 * D]

        # Normalize all heads in place (EUP reciprocal, f32 VPU), cast ONCE,
        # then a single (TQ, D) @ (D, D) projection matmul (full MXU depth).
        inv_l = pl.reciprocal(l_scr[...], approx=True)        # (H, TQ, 1)
        o3 = (acc_scr[...] * inv_l).astype(cdt)               # (H, TQ, Dh) bf16
        attn_out = jnp.concatenate([o3[h] for h in range(H)], axis=-1)  # (TQ, D)

        y = jnp.dot(attn_out, w_proj_ref[...],
                    preferred_element_type=jnp.float32) + b_proj_ref[...]

        x = x_ref[0].astype(jnp.float32)
        x1 = x + gate_msa * y                  # attention residual (f32)

        # ---- MLP branch, hidden dimension processed in chunks ----
        xn2 = _layernorm(x1)
        xm2 = (xn2 * (1.0 + scale_mlp) + shift_mlp).astype(w_fc1_ref.dtype)

        MH = w_fc1_ref.shape[-1]
        mlp = jnp.zeros((TQ, D), jnp.float32)
        for c0 in range(0, MH, mlp_chunk):
            c1 = min(c0 + mlp_chunk, MH)
            hdn = jnp.dot(xm2, w_fc1_ref[:, c0:c1],
                          preferred_element_type=jnp.float32) + b_fc1_ref[:, c0:c1]
            hdn = _gelu_tanh(hdn).astype(w_fc2_ref.dtype)
            mlp = mlp + jnp.dot(hdn, w_fc2_ref[c0:c1, :],
                                preferred_element_type=jnp.float32)
        mlp = mlp + b_fc2_ref[...]

        o_ref[0] = (x1 + gate_mlp * mlp).astype(o_ref.dtype)


# --------------------------------------------------------------------------
# Wrapper helpers
# --------------------------------------------------------------------------
def _pick_tile(n, target):
    """Largest multiple-of-8 divisor of n that is <= target (or n itself)."""
    if n <= target:
        return n
    if n % target == 0:
        return target
    for t in range(target, 7, -8):
        if n % t == 0:
            return t
    # Fallback: full axis. For very long, divisor-free N this can blow VMEM;
    # such sequence lengths should be padded upstream.
    return n


def _pick_chunk(n, target):
    if n <= target:
        return n
    if n % target == 0:
        return target
    for t in range(target, 127, -128):
        if n % t == 0:
            return t
    return n


def _tpu_tuning():
    """Per-device VMEM limit, query-tile target and exp-dtype choice."""
    kind = ""
    try:
        kind = jax.devices()[0].device_kind.lower()
    except Exception:
        pass

    vmem_cap = None
    try:
        info = pltpu.get_tpu_info()
        cap = getattr(info, "vmem_capacity_bytes", None)
        if cap:
            vmem_cap = int(cap)
    except Exception:
        vmem_cap = None
    if vmem_cap is None:
        # v5e / v5p / v6e have 128 MiB VMEM per TensorCore; be conservative
        # (64 MiB, e.g. v7x / unknown) otherwise.
        big = ("v5" in kind) or ("v6" in kind)
        vmem_cap = (128 if big else 64) * 1024 * 1024

    # Leave headroom for compiler-internal scratch / semaphores / pipelining.
    vmem_limit = min(vmem_cap - 12 * 1024 * 1024, 100 * 1024 * 1024)
    vmem_limit = max(vmem_limit, 32 * 1024 * 1024)

    tq_target = 512 if vmem_limit >= 96 * 1024 * 1024 else 256
    tk_target = 512
    # bf16 transcendental path exists on v6e / v7x; keep f32 exp on v5-class.
    exp_bf16 = ("v6" in kind) or ("v7" in kind)
    return vmem_limit, tq_target, tk_target, exp_bf16


def _const_spec(arr, single_buffer):
    """BlockSpec for a grid-invariant (weight/bias) operand."""
    nd = arr.ndim
    idx = lambda *args, _nd=nd: (0,) * _nd
    if single_buffer and hasattr(pl, "Buffered"):
        try:
            # Constant index_map -> the default double buffer is pure waste.
            return pl.BlockSpec(arr.shape, idx, pipeline_mode=pl.Buffered(1))
        except Exception:
            pass
    return pl.BlockSpec(arr.shape, idx)


# --------------------------------------------------------------------------
# Public entry point
# --------------------------------------------------------------------------
def transformer_block(x, c, params, num_heads, *, compute_dtype=jnp.bfloat16):
    B, N, D = x.shape
    assert D % num_heads == 0
    H = num_heads
    Dh = D // H
    (w_ada, b_ada, w_qkv, b_qkv, w_proj, b_proj,
     w_fc1, b_fc1, w_fc2, b_fc2) = params
    MH = w_fc1.shape[1]

    # ---- adaLN-Zero projection hoisted out of the kernel (plain XLA) ----
    mod = jax.nn.silu(c.astype(jnp.float32)) @ w_ada.astype(jnp.float32) \
        + b_ada.astype(jnp.float32)                       # (B, 6D)
    mod = mod[:, None, :]                                 # (B, 1, 6D) f32

    # MXU operands in bf16 (weights); biases / accumulators stay f32.
    w_qkv_c = w_qkv.astype(compute_dtype)
    w_proj_c = w_proj.astype(compute_dtype)
    w_fc1_c = w_fc1.astype(compute_dtype)
    w_fc2_c = w_fc2.astype(compute_dtype)

    vmem_limit, tq_target, tk_target, exp_bf16 = _tpu_tuning()
    TQ = _pick_tile(N, tq_target)      # query / token tile
    TK = _pick_tile(N, tk_target)      # key-value tile
    mlp_chunk = _pick_chunk(MH, 1536)

    cparams_2d = pltpu.CompilerParams(
        dimension_semantics=("parallel", "parallel"),
        vmem_limit_bytes=vmem_limit)
    cparams_3d = pltpu.CompilerParams(
        dimension_semantics=("parallel", "parallel", "arbitrary"),
        vmem_limit_bytes=vmem_limit)

    def run(single_buffer):
        const = functools.partial(_const_spec, single_buffer=single_buffer)

        # ------------------ Kernel A: qkv projection ------------------
        q, k, v = pl.pallas_call(
            functools.partial(qkv_proj_kernel, num_heads=H),
            out_shape=[jax.ShapeDtypeStruct((B, H, N, Dh), compute_dtype)] * 3,
            grid_spec=pltpu.PrefetchScalarGridSpec(
                num_scalar_prefetch=0,
                grid=(B, N // TQ),
                in_specs=[
                    pl.BlockSpec((1, TQ, D), lambda b, t: (b, t, 0)),      # x tile
                    pl.BlockSpec((1, 1, 6 * D), lambda b, t: (b, 0, 0)),   # modulation
                    const(w_qkv_c),
                    const(b_qkv),
                ],
                out_specs=[pl.BlockSpec((1, H, TQ, Dh),
                                        lambda b, t: (b, 0, t, 0))] * 3,
            ),
            compiler_params=cparams_2d,
        )(x, mod, w_qkv_c, b_qkv)

        # ------------- Kernel B: flash attention + MLP epilogue -------------
        kernel_b = functools.partial(attn_mlp_kernel, num_heads=H,
                                     mlp_chunk=mlp_chunk, exp_bf16=exp_bf16)
        out = pl.pallas_call(
            kernel_b,
            out_shape=jax.ShapeDtypeStruct((B, N, D), x.dtype),
            grid_spec=pltpu.PrefetchScalarGridSpec(
                num_scalar_prefetch=0,
                grid=(B, N // TQ, N // TK),
                in_specs=[
                    pl.BlockSpec((1, TQ, D), lambda b, qi, ki: (b, qi, 0)),      # x tile
                    pl.BlockSpec((1, 1, 6 * D), lambda b, qi, ki: (b, 0, 0)),    # modulation
                    pl.BlockSpec((1, H, TQ, Dh), lambda b, qi, ki: (b, 0, qi, 0)),  # q
                    pl.BlockSpec((1, H, TK, Dh), lambda b, qi, ki: (b, 0, ki, 0)),  # k
                    pl.BlockSpec((1, H, TK, Dh), lambda b, qi, ki: (b, 0, ki, 0)),  # v
                    const(w_proj_c), const(b_proj),
                    const(w_fc1_c), const(b_fc1),
                    const(w_fc2_c), const(b_fc2),
                ],
                out_specs=pl.BlockSpec((1, TQ, D), lambda b, qi, ki: (b, qi, 0)),
                scratch_shapes=[
                    pltpu.VMEM((H, TQ, 1), jnp.float32),    # running max per head
                    pltpu.VMEM((H, TQ, 1), jnp.float32),    # running sum per head
                    pltpu.VMEM((H, TQ, Dh), jnp.float32),   # unnormalized attn acc
                ],
            ),
            compiler_params=cparams_3d,
        )(x, mod, q, k, v, w_proj_c, b_proj, w_fc1_c, b_fc1, w_fc2_c, b_fc2)
        return out

    try:
        return run(single_buffer=True)
    except Exception:
        # Fall back to default (double-buffered) weight specs on JAX versions /
        # configs where pl.Buffered(1) is rejected.
        return run(single_buffer=False)


# ---------------- pure-JAX reference (for a sanity check) ----------------
def reference_block(x, c, params, num_heads):
    (w_ada, b_ada, w_qkv, b_qkv, w_proj, b_proj,
     w_fc1, b_fc1, w_fc2, b_fc2) = params
    B, N, D = x.shape
    H, Dh = num_heads, D // num_heads

    ada = jax.nn.silu(c) @ w_ada + b_ada[0]
    sh_msa, sc_msa, g_msa, sh_mlp, sc_mlp, g_mlp = jnp.split(ada, 6, axis=1)

    def ln(v):
        m = v.mean(-1, keepdims=True)
        var = ((v - m) ** 2).mean(-1, keepdims=True)
        return (v - m) / jnp.sqrt(var + 1e-6)

    def modulate(v, shift, scale):
        return v * (1 + scale[:, None, :]) + shift[:, None, :]

    xm = modulate(ln(x), sh_msa, sc_msa)
    qkv = xm @ w_qkv + b_qkv[0]
    qkv = qkv.reshape(B, N, 3, H, Dh).transpose(2, 0, 3, 1, 4)
    q, k, v = qkv[0], qkv[1], qkv[2]
    attn = jnp.einsum('bhnd,bhmd->bhnm', q, k) * (Dh ** -0.5)
    attn = jax.nn.softmax(attn, axis=-1)
    out = jnp.einsum('bhnm,bhmd->bhnd', attn, v)
    out = out.transpose(0, 2, 1, 3).reshape(B, N, D) @ w_proj + b_proj[0]
    x1 = x + g_msa[:, None, :] * out

    xm2 = modulate(ln(x1), sh_mlp, sc_mlp)
    h = jax.nn.gelu(xm2 @ w_fc1 + b_fc1[0], approximate=True)
    h = h @ w_fc2 + b_fc2[0]
    return x1 + g_mlp[:, None, :] * h


def init_params(key, hidden, mlp_hidden, scale=0.02):
    def lin(k, din, dout):
        kw, kb = jax.random.split(k)
        return (jax.random.normal(kw, (din, dout), jnp.float32) * scale,
                jax.random.normal(kb, (1, dout), jnp.float32) * scale)

    k1, k2, k3, k4, k5 = jax.random.split(key, 5)
    w_ada, b_ada = lin(k1, hidden, 6 * hidden)
    w_qkv, b_qkv = lin(k2, hidden, 3 * hidden)
    w_proj, b_proj = lin(k3, hidden, hidden)
    w_fc1, b_fc1 = lin(k4, hidden, mlp_hidden)
    w_fc2, b_fc2 = lin(k5, mlp_hidden, hidden)
    return (w_ada, b_ada, w_qkv, b_qkv, w_proj, b_proj,
            w_fc1, b_fc1, w_fc2, b_fc2)


if __name__ == "__main__":
    B, N, D = 2, 8, 32          # batch, seq, hidden (small sanity-check shapes)
    num_heads = 4
    mlp_hidden = int(D * 4.0)

    key = jax.random.PRNGKey(0)
    kx, kc, kp = jax.random.split(key, 3)
    x = jax.random.normal(kx, (B, N, D), jnp.float32)
    c = jax.random.normal(kc, (B, D), jnp.float32)
    params = init_params(kp, D, mlp_hidden)

    out = transformer_block(x, c, params, num_heads)
    out = jax.block_until_ready(out)

    ref = reference_block(x, c, params, num_heads)
    assert out.shape == (B, N, D)
    # bf16 MXU operands (+ optional bf16 exp) -> compare against the f32
    # reference with a bf16-level tolerance.
    assert jnp.allclose(out, ref, rtol=2e-2, atol=2e-2), \
        f"max abs err {jnp.max(jnp.abs(out - ref))}"

    print("KERNEL_OK")
</pallas_src>

<mosaic_0001>
module attributes {stable_mosaic.version = 11 : i64} {
  func.func @qkv_proj_kernel(%arg0: i32, %arg1: i32, %arg2: memref<1x8x32xf32, #tpu.memory_space<vmem>>, %arg3: memref<1x1x192xf32, #tpu.memory_space<vmem>>, %arg4: memref<32x96xbf16, #tpu.memory_space<vmem>>, %arg5: memref<1x96xf32, #tpu.memory_space<vmem>>, %arg6: memref<1x4x8x8xbf16, #tpu.memory_space<vmem>>, %arg7: memref<1x4x8x8xbf16, #tpu.memory_space<vmem>>, %arg8: memref<1x4x8x8xbf16, #tpu.memory_space<vmem>>) attributes {dimension_semantics = [#tpu.dimension_semantics<parallel>, #tpu.dimension_semantics<parallel>], iteration_bounds = array<i64: 2, 1>, scalar_prefetch = 0 : i64, scratch_operands = 0 : i64, tpu.core_type = #tpu.core_type<tc>, window_params = [{transform_indices = @transform_0, window_bounds = array<i64: 1, 8, 32>}, {transform_indices = @transform_1, window_bounds = array<i64: 1, 1, 192>}, {pipeline_mode = #tpu.pipeline_mode<synchronous>, transform_indices = @transform_2, window_bounds = array<i64: 32, 96>}, {pipeline_mode = #tpu.pipeline_mode<synchronous>, transform_indices = @transform_3, window_bounds = array<i64: 1, 96>}, {transform_indices = @transform_4, window_bounds = array<i64: 1, 4, 8, 8>}, {transform_indices = @transform_5, window_bounds = array<i64: 1, 4, 8, 8>}, {transform_indices = @transform_6, window_bounds = array<i64: 1, 4, 8, 8>}]} {
    %c0 = arith.constant 0 : index
    %c0_0 = arith.constant 0 : index
    %c0_1 = arith.constant 0 : index
    %0 = vector.load %arg2[%c0, %c0_0, %c0_1] : memref<1x8x32xf32, #tpu.memory_space<vmem>>, vector<1x8x32xf32>
    %1 = vector.shape_cast %0 : vector<1x8x32xf32> to vector<8x32xf32>
    %c0_2 = arith.constant 0 : index
    %c0_3 = arith.constant 0 : index
    %c0_4 = arith.constant 0 : index
    %2 = vector.load %arg3[%c0_2, %c0_3, %c0_4] : memref<1x1x192xf32, #tpu.memory_space<vmem>>, vector<1x1x192xf32>
    %3 = vector.shape_cast %2 : vector<1x1x192xf32> to vector<1x192xf32>
    %4 = vector.extract_strided_slice %3 {offsets = [0, 0], sizes = [1, 32], strides = [1, 1]} : vector<1x192xf32> to vector<1x32xf32>
    %5 = vector.extract_strided_slice %3 {offsets = [0, 32], sizes = [1, 32], strides = [1, 1]} : vector<1x192xf32> to vector<1x32xf32>
    %cst = arith.constant dense<0.000000e+00> : vector<8xf32>
    %6 = vector.multi_reduction <add>, %1, %cst [1] : vector<8x32xf32> to vector<8xf32>
    %7 = vector.shape_cast %6 : vector<8xf32> to vector<8x1xf32>
    %cst_5 = arith.constant 3.200000e+01 : f32
    %8 = vector.broadcast %cst_5 : f32 to vector<8x1xf32>
    %9 = arith.divf %7, %8 : vector<8x1xf32>
    %10 = vector.broadcast %9 : vector<8x1xf32> to vector<8x32xf32>
    %11 = arith.subf %1, %10 : vector<8x32xf32>
    %12 = arith.mulf %11, %11 : vector<8x32xf32>
    %cst_6 = arith.constant dense<0.000000e+00> : vector<8xf32>
    %13 = vector.multi_reduction <add>, %12, %cst_6 [1] : vector<8x32xf32> to vector<8xf32>
    %14 = vector.shape_cast %13 : vector<8xf32> to vector<8x1xf32>
    %cst_7 = arith.constant 3.200000e+01 : f32
    %15 = vector.broadcast %cst_7 : f32 to vector<8x1xf32>
    %16 = arith.divf %14, %15 : vector<8x1xf32>
    %17 = vector.broadcast %9 : vector<8x1xf32> to vector<8x32xf32>
    %18 = arith.subf %1, %17 : vector<8x32xf32>
    %cst_8 = arith.constant 9.99999997E-7 : f32
    %19 = vector.broadcast %cst_8 : f32 to vector<8x1xf32>
    %20 = arith.addf %16, %19 : vector<8x1xf32>
    %21 = math.rsqrt %20 : vector<8x1xf32>
    %22 = vector.broadcast %21 : vector<8x1xf32> to vector<8x32xf32>
    %23 = arith.mulf %18, %22 : vector<8x32xf32>
    %cst_9 = arith.constant 1.000000e+00 : f32
    %24 = vector.broadcast %cst_9 : f32 to vector<1x32xf32>
    %25 = arith.addf %24, %5 : vector<1x32xf32>
    %26 = vector.broadcast %25 : vector<1x32xf32> to vector<8x32xf32>
    %27 = arith.mulf %23, %26 : vector<8x32xf32>
    %28 = vector.broadcast %4 : vector<1x32xf32> to vector<8x32xf32>
    %29 = arith.addf %27, %28 : vector<8x32xf32>
    %30 = arith.truncf %29 : vector<8x32xf32> to vector<8x32xbf16>
    %c0_10 = arith.constant 0 : index
    %c0_11 = arith.constant 0 : index
    %31 = vector.load %arg4[%c0_10, %c0_11] : memref<32x96xbf16, #tpu.memory_space<vmem>>, vector<32x96xbf16>
    %cst_12 = arith.constant dense<0.000000e+00> : vector<8x96xf32>
    %32 = tpu.matmul %30, %31, %cst_12 {dimension_numbers = #tpu.dot_dimension_numbers<[1], [0], [0], [1], [0, 0, 1, 1], [], []>} : vector<8x32xbf16>, vector<32x96xbf16>, vector<8x96xf32> -> vector<8x96xf32>
    %c0_13 = arith.constant 0 : index
    %c0_14 = arith.constant 0 : index
    %33 = vector.load %arg5[%c0_13, %c0_14] : memref<1x96xf32, #tpu.memory_space<vmem>>, vector<1x96xf32>
    %34 = vector.broadcast %33 : vector<1x96xf32> to vector<8x96xf32>
    %35 = arith.addf %32, %34 : vector<8x96xf32>
    %36 = arith.truncf %35 : vector<8x96xf32> to vector<8x96xbf16>
    %37 = vector.extract_strided_slice %36 {offsets = [0, 0], sizes = [8, 8], strides = [1, 1]} : vector<8x96xbf16> to vector<8x8xbf16>
    %c0_15 = arith.constant 0 : index
    %c0_16 = arith.constant 0 : index
    %c0_17 = arith.constant 0 : index
    %c0_18 = arith.constant 0 : index
    %38 = vector.load %arg6[%c0_15, %c0_16, %c0_17, %c0_18] : memref<1x4x8x8xbf16, #tpu.memory_space<vmem>>, vector<1x1x8x8xbf16>
    %39 = vector.shape_cast %38 : vector<1x1x8x8xbf16> to vector<8x8xbf16>
    %40 = vector.shape_cast %37 : vector<8x8xbf16> to vector<1x1x8x8xbf16>
    tpu.vector_store %arg6[%c0_15, %c0_16, %c0_17, %c0_18], %40 {strides = array<i32>} : memref<1x4x8x8xbf16, #tpu.memory_space<vmem>>, vector<1x1x8x8xbf16>,
    %41 = vector.extract_strided_slice %36 {offsets = [0, 32], sizes = [8, 8], strides = [1, 1]} : vector<8x96xbf16> to vector<8x8xbf16>
    %c0_19 = arith.constant 0 : index
    %c0_20 = arith.constant 0 : index
    %c0_21 = arith.constant 0 : index
    %c0_22 = arith.constant 0 : index
    %42 = vector.load %arg7[%c0_19, %c0_20, %c0_21, %c0_22] : memref<1x4x8x8xbf16, #tpu.memory_space<vmem>>, vector<1x1x8x8xbf16>
    %43 = vector.shape_cast %42 : vector<1x1x8x8xbf16> to vector<8x8xbf16>
    %44 = vector.shape_cast %41 : vector<8x8xbf16> to vector<1x1x8x8xbf16>
    tpu.vector_store %arg7[%c0_19, %c0_20, %c0_21, %c0_22], %44 {strides = array<i32>} : memref<1x4x8x8xbf16, #tpu.memory_space<vmem>>, vector<1x1x8x8xbf16>,
    %45 = vector.extract_strided_slice %36 {offsets = [0, 64], sizes = [8, 8], strides = [1, 1]} : vector<8x96xbf16> to vector<8x8xbf16>
    %c0_23 = arith.constant 0 : index
    %c0_24 = arith.constant 0 : index
    %c0_25 = arith.constant 0 : index
    %c0_26 = arith.constant 0 : index
    %46 = vector.load %arg8[%c0_23, %c0_24, %c0_25, %c0_26] : memref<1x4x8x8xbf16, #tpu.memory_space<vmem>>, vector<1x1x8x8xbf16>
    %47 = vector.shape_cast %46 : vector<1x1x8x8xbf16> to vector<8x8xbf16>
    %48 = vector.shape_cast %45 : vector<8x8xbf16> to vector<1x1x8x8xbf16>
    tpu.vector_store %arg8[%c0_23, %c0_24, %c0_25, %c0_26], %48 {strides = array<i32>} : memref<1x4x8x8xbf16, #tpu.memory_space<vmem>>, vector<1x1x8x8xbf16>,
    %49 = vector.extract_strided_slice %36 {offsets = [0, 8], sizes = [8, 8], strides = [1, 1]} : vector<8x96xbf16> to vector<8x8xbf16>
    %c0_27 = arith.constant 0 : index
    %c1 = arith.constant 1 : index
    %c0_28 = arith.constant 0 : index
    %c0_29 = arith.constant 0 : index
    %50 = vector.load %arg6[%c0_27, %c1, %c0_28, %c0_29] : memref<1x4x8x8xbf16, #tpu.memory_space<vmem>>, vector<1x1x8x8xbf16>
    %51 = vector.shape_cast %50 : vector<1x1x8x8xbf16> to vector<8x8xbf16>
    %52 = vector.shape_cast %49 : vector<8x8xbf16> to vector<1x1x8x8xbf16>
    tpu.vector_store %arg6[%c0_27, %c1, %c0_28, %c0_29], %52 {strides = array<i32>} : memref<1x4x8x8xbf16, #tpu.memory_space<vmem>>, vector<1x1x8x8xbf16>,
    %53 = vector.extract_strided_slice %36 {offsets = [0, 40], sizes = [8, 8], strides = [1, 1]} : vector<8x96xbf16> to vector<8x8xbf16>
    %c0_30 = arith.constant 0 : index
    %c1_31 = arith.constant 1 : index
    %c0_32 = arith.constant 0 : index
    %c0_33 = arith.constant 0 : index
    %54 = vector.load %arg7[%c0_30, %c1_31, %c0_32, %c0_33] : memref<1x4x8x8xbf16, #tpu.memory_space<vmem>>, vector<1x1x8x8xbf16>
    %55 = vector.shape_cast %54 : vector<1x1x8x8xbf16> to vector<8x8xbf16>
    %56 = vector.shape_cast %53 : vector<8x8xbf16> to vector<1x1x8x8xbf16>
    tpu.vector_store %arg7[%c0_30, %c1_31, %c0_32, %c0_33], %56 {strides = array<i32>} : memref<1x4x8x8xbf16, #tpu.memory_space<vmem>>, vector<1x1x8x8xbf16>,
    %57 = vector.extract_strided_slice %36 {offsets = [0, 72], sizes = [8, 8], strides = [1, 1]} : vector<8x96xbf16> to vector<8x8xbf16>
    %c0_34 = arith.constant 0 : index
    %c1_35 = arith.constant 1 : index
    %c0_36 = arith.constant 0 : index
    %c0_37 = arith.constant 0 : index
    %58 = vector.load %arg8[%c0_34, %c1_35, %c0_36, %c0_37] : memref<1x4x8x8xbf16, #tpu.memory_space<vmem>>, vector<1x1x8x8xbf16>
    %59 = vector.shape_cast %58 : vector<1x1x8x8xbf16> to vector<8x8xbf16>
    %60 = vector.shape_cast %57 : vector<8x8xbf16> to vector<1x1x8x8xbf16>
    tpu.vector_store %arg8[%c0_34, %c1_35, %c0_36, %c0_37], %60 {strides = array<i32>} : memref<1x4x8x8xbf16, #tpu.memory_space<vmem>>, vector<1x1x8x8xbf16>,
    %61 = vector.extract_strided_slice %36 {offsets = [0, 16], sizes = [8, 8], strides = [1, 1]} : vector<8x96xbf16> to vector<8x8xbf16>
    %c0_38 = arith.constant 0 : index
    %c2 = arith.constant 2 : index
    %c0_39 = arith.constant 0 : index
    %c0_40 = arith.constant 0 : index
    %62 = vector.load %arg6[%c0_38, %c2, %c0_39, %c0_40] : memref<1x4x8x8xbf16, #tpu.memory_space<vmem>>, vector<1x1x8x8xbf16>
    %63 = vector.shape_cast %62 : vector<1x1x8x8xbf16> to vector<8x8xbf16>
    %64 = vector.shape_cast %61 : vector<8x8xbf16> to vector<1x1x8x8xbf16>
    tpu.vector_store %arg6[%c0_38, %c2, %c0_39, %c0_40], %64 {strides = array<i32>} : memref<1x4x8x8xbf16, #tpu.memory_space<vmem>>, vector<1x1x8x8xbf16>,
    %65 = vector.extract_strided_slice %36 {offsets = [0, 48], sizes = [8, 8], strides = [1, 1]} : vector<8x96xbf16> to vector<8x8xbf16>
    %c0_41 = arith.constant 0 : index
    %c2_42 = arith.constant 2 : index
    %c0_43 = arith.constant 0 : index
    %c0_44 = arith.constant 0 : index
    %66 = vector.load %arg7[%c0_41, %c2_42, %c0_43, %c0_44] : memref<1x4x8x8xbf16, #tpu.memory_space<vmem>>, vector<1x1x8x8xbf16>
    %67 = vector.shape_cast %66 : vector<1x1x8x8xbf16> to vector<8x8xbf16>
    %68 = vector.shape_cast %65 : vector<8x8xbf16> to vector<1x1x8x8xbf16>
    tpu.vector_store %arg7[%c0_41, %c2_42, %c0_43, %c0_44], %68 {strides = array<i32>} : memref<1x4x8x8xbf16, #tpu.memory_space<vmem>>, vector<1x1x8x8xbf16>,
    %69 = vector.extract_strided_slice %36 {offsets = [0, 80], sizes = [8, 8], strides = [1, 1]} : vector<8x96xbf16> to vector<8x8xbf16>
    %c0_45 = arith.constant 0 : index
    %c2_46 = arith.constant 2 : index
    %c0_47 = arith.constant 0 : index
    %c0_48 = arith.constant 0 : index
    %70 = vector.load %arg8[%c0_45, %c2_46, %c0_47, %c0_48] : memref<1x4x8x8xbf16, #tpu.memory_space<vmem>>, vector<1x1x8x8xbf16>
    %71 = vector.shape_cast %70 : vector<1x1x8x8xbf16> to vector<8x8xbf16>
    %72 = vector.shape_cast %69 : vector<8x8xbf16> to vector<1x1x8x8xbf16>
    tpu.vector_store %arg8[%c0_45, %c2_46, %c0_47, %c0_48], %72 {strides = array<i32>} : memref<1x4x8x8xbf16, #tpu.memory_space<vmem>>, vector<1x1x8x8xbf16>,
    %73 = vector.extract_strided_slice %36 {offsets = [0, 24], sizes = [8, 8], strides = [1, 1]} : vector<8x96xbf16> to vector<8x8xbf16>
    %c0_49 = arith.constant 0 : index
    %c3 = arith.constant 3 : index
    %c0_50 = arith.constant 0 : index
    %c0_51 = arith.constant 0 : index
    %74 = vector.load %arg6[%c0_49, %c3, %c0_50, %c0_51] : memref<1x4x8x8xbf16, #tpu.memory_space<vmem>>, vector<1x1x8x8xbf16>
    %75 = vector.shape_cast %74 : vector<1x1x8x8xbf16> to vector<8x8xbf16>
    %76 = vector.shape_cast %73 : vector<8x8xbf16> to vector<1x1x8x8xbf16>
    tpu.vector_store %arg6[%c0_49, %c3, %c0_50, %c0_51], %76 {strides = array<i32>} : memref<1x4x8x8xbf16, #tpu.memory_space<vmem>>, vector<1x1x8x8xbf16>,
    %77 = vector.extract_strided_slice %36 {offsets = [0, 56], sizes = [8, 8], strides = [1, 1]} : vector<8x96xbf16> to vector<8x8xbf16>
    %c0_52 = arith.constant 0 : index
    %c3_53 = arith.constant 3 : index
    %c0_54 = arith.constant 0 : index
    %c0_55 = arith.constant 0 : index
    %78 = vector.load %arg7[%c0_52, %c3_53, %c0_54, %c0_55] : memref<1x4x8x8xbf16, #tpu.memory_space<vmem>>, vector<1x1x8x8xbf16>
    %79 = vector.shape_cast %78 : vector<1x1x8x8xbf16> to vector<8x8xbf16>
    %80 = vector.shape_cast %77 : vector<8x8xbf16> to vector<1x1x8x8xbf16>
    tpu.vector_store %arg7[%c0_52, %c3_53, %c0_54, %c0_55], %80 {strides = array<i32>} : memref<1x4x8x8xbf16, #tpu.memory_space<vmem>>, vector<1x1x8x8xbf16>,
    %81 = vector.extract_strided_slice %36 {offsets = [0, 88], sizes = [8, 8], strides = [1, 1]} : vector<8x96xbf16> to vector<8x8xbf16>
    %c0_56 = arith.constant 0 : index
    %c3_57 = arith.constant 3 : index
    %c0_58 = arith.constant 0 : index
    %c0_59 = arith.constant 0 : index
    %82 = vector.load %arg8[%c0_56, %c3_57, %c0_58, %c0_59] : memref<1x4x8x8xbf16, #tpu.memory_space<vmem>>, vector<1x1x8x8xbf16>
    %83 = vector.shape_cast %82 : vector<1x1x8x8xbf16> to vector<8x8xbf16>
    %84 = vector.shape_cast %81 : vector<8x8xbf16> to vector<1x1x8x8xbf16>
    tpu.vector_store %arg8[%c0_56, %c3_57, %c0_58, %c0_59], %84 {strides = array<i32>} : memref<1x4x8x8xbf16, #tpu.memory_space<vmem>>, vector<1x1x8x8xbf16>,
    return
  }
  func.func @transform_0(%arg0: i32, %arg1: i32) -> (i32, i32, i32) {
    %c0_i32 = arith.constant 0 : i32
    %c0_i32_0 = arith.constant 0 : i32
    return %arg0, %arg1, %c0_i32 : i32, i32, i32
  }
  func.func @transform_1(%arg0: i32, %arg1: i32) -> (i32, i32, i32) {
    %c0_i32 = arith.constant 0 : i32
    %c0_i32_0 = arith.constant 0 : i32
    %c0_i32_1 = arith.constant 0 : i32
    return %arg0, %c0_i32, %c0_i32_0 : i32, i32, i32
  }
  func.func @transform_2(%arg0: i32, %arg1: i32) -> (i32, i32) {
    %c0_i32 = arith.constant 0 : i32
    %c0_i32_0 = arith.constant 0 : i32
    %c0_i32_1 = arith.constant 0 : i32
    return %c0_i32, %c0_i32_0 : i32, i32
  }
  func.func @transform_3(%arg0: i32, %arg1: i32) -> (i32, i32) {
    %c0_i32 = arith.constant 0 : i32
    %c0_i32_0 = arith.constant 0 : i32
    %c0_i32_1 = arith.constant 0 : i32
    return %c0_i32, %c0_i32_0 : i32, i32
  }
  func.func @transform_4(%arg0: i32, %arg1: i32) -> (i32, i32, i32, i32) {
    %c0_i32 = arith.constant 0 : i32
    %c0_i32_0 = arith.constant 0 : i32
    %c0_i32_1 = arith.constant 0 : i32
    return %arg0, %c0_i32, %arg1, %c0_i32_0 : i32, i32, i32, i32
  }
  func.func @transform_5(%arg0: i32, %arg1: i32) -> (i32, i32, i32, i32) {
    %c0_i32 = arith.constant 0 : i32
    %c0_i32_0 = arith.constant 0 : i32
    %c0_i32_1 = arith.constant 0 : i32
    return %arg0, %c0_i32, %arg1, %c0_i32_0 : i32, i32, i32, i32
  }
  func.func @transform_6(%arg0: i32, %arg1: i32) -> (i32, i32, i32, i32) {
    %c0_i32 = arith.constant 0 : i32
    %c0_i32_0 = arith.constant 0 : i32
    %c0_i32_1 = arith.constant 0 : i32
    return %arg0, %c0_i32, %arg1, %c0_i32_0 : i32, i32, i32, i32
  }
}

module attributes {stable_mosaic.version = 11 : i64} {
  func.func @qkv_proj_kernel(%arg0: i32, %arg1: i32, %arg2: memref<1x8x32xf32, #tpu.memory_space<vmem>>, %arg3: memref<1x1x192xf32, #tpu.memory_space<vmem>>, %arg4: memref<32x96xbf16, #tpu.memory_space<vmem>>, %arg5: memref<1x96xf32, #tpu.memory_space<vmem>>, %arg6: memref<1x4x8x8xbf16, #tpu.memory_space<vmem>>, %arg7: memref<1x4x8x8xbf16, #tpu.memory_space<vmem>>, %arg8: memref<1x4x8x8xbf16, #tpu.memory_space<vmem>>) attributes {dimension_semantics = [#tpu.dimension_semantics<parallel>, #tpu.dimension_semantics<parallel>], iteration_bounds = array<i64: 2, 1>, scalar_prefetch = 0 : i64, scratch_operands = 0 : i64, tpu.core_type = #tpu.core_type<tc>, window_params = [{transform_indices = @transform_0, window_bounds = array<i64: 1, 8, 32>}, {transform_indices = @transform_1, window_bounds = array<i64: 1, 1, 192>}, {pipeline_mode = #tpu.pipeline_mode<synchronous>, transform_indices = @transform_2, window_bounds = array<i64: 32, 96>}, {pipeline_mode = #tpu.pipeline_mode<synchronous>, transform_indices = @transform_3, window_bounds = array<i64: 1, 96>}, {transform_indices = @transform_4, window_bounds = array<i64: 1, 4, 8, 8>}, {transform_indices = @transform_5, window_bounds = array<i64: 1, 4, 8, 8>}, {transform_indices = @transform_6, window_bounds = array<i64: 1, 4, 8, 8>}]} {
    %c0 = arith.constant 0 : index
    %c0_0 = arith.constant 0 : index
    %c0_1 = arith.constant 0 : index
    %0 = vector.load %arg2[%c0, %c0_0, %c0_1] : memref<1x8x32xf32, #tpu.memory_space<vmem>>, vector<1x8x32xf32>
    %1 = vector.shape_cast %0 : vector<1x8x32xf32> to vector<8x32xf32>
    %c0_2 = arith.constant 0 : index
    %c0_3 = arith.constant 0 : index
    %c0_4 = arith.constant 0 : index
    %2 = vector.load %arg3[%c0_2, %c0_3, %c0_4] : memref<1x1x192xf32, #tpu.memory_space<vmem>>, vector<1x1x192xf32>
    %3 = vector.shape_cast %2 : vector<1x1x192xf32> to vector<1x192xf32>
    %4 = vector.extract_strided_slice %3 {offsets = [0, 0], sizes = [1, 32], strides = [1, 1]} : vector<1x192xf32> to vector<1x32xf32>
    %5 = vector.extract_strided_slice %3 {offsets = [0, 32], sizes = [1, 32], strides = [1, 1]} : vector<1x192xf32> to vector<1x32xf32>
    %cst = arith.constant dense<0.000000e+00> : vector<8xf32>
    %6 = vector.multi_reduction <add>, %1, %cst [1] : vector<8x32xf32> to vector<8xf32>
    %7 = vector.shape_cast %6 : vector<8xf32> to vector<8x1xf32>
    %cst_5 = arith.constant 3.200000e+01 : f32
    %8 = vector.broadcast %cst_5 : f32 to vector<8x1xf32>
    %9 = arith.divf %7, %8 : vector<8x1xf32>
    %10 = vector.broadcast %9 : vector<8x1xf32> to vector<8x32xf32>
    %11 = arith.subf %1, %10 : vector<8x32xf32>
    %12 = arith.mulf %11, %11 : vector<8x32xf32>
    %cst_6 = arith.constant dense<0.000000e+00> : vector<8xf32>
    %13 = vector.multi_reduction <add>, %12, %cst_6 [1] : vector<8x32xf32> to vector<8xf32>
    %14 = vector.shape_cast %13 : vector<8xf32> to vector<8x1xf32>
    %cst_7 = arith.constant 3.200000e+01 : f32
    %15 = vector.broadcast %cst_7 : f32 to vector<8x1xf32>
    %16 = arith.divf %14, %15 : vector<8x1xf32>
    %17 = vector.broadcast %9 : vector<8x1xf32> to vector<8x32xf32>
    %18 = arith.subf %1, %17 : vector<8x32xf32>
    %cst_8 = arith.constant 9.99999997E-7 : f32
    %19 = vector.broadcast %cst_8 : f32 to vector<8x1xf32>
    %20 = arith.addf %16, %19 : vector<8x1xf32>
    %21 = math.rsqrt %20 : vector<8x1xf32>
    %22 = vector.broadcast %21 : vector<8x1xf32> to vector<8x32xf32>
    %23 = arith.mulf %18, %22 : vector<8x32xf32>
    %cst_9 = arith.constant 1.000000e+00 : f32
    %24 = vector.broadcast %cst_9 : f32 to vector<1x32xf32>
    %25 = arith.addf %24, %5 : vector<1x32xf32>
    %26 = vector.broadcast %25 : vector<1x32xf32> to vector<8x32xf32>
    %27 = arith.mulf %23, %26 : vector<8x32xf32>
    %28 = vector.broadcast %4 : vector<1x32xf32> to vector<8x32xf32>
    %29 = arith.addf %27, %28 : vector<8x32xf32>
    %30 = arith.truncf %29 : vector<8x32xf32> to vector<8x32xbf16>
    %c0_10 = arith.constant 0 : index
    %c0_11 = arith.constant 0 : index
    %31 = vector.load %arg4[%c0_10, %c0_11] : memref<32x96xbf16, #tpu.memory_space<vmem>>, vector<32x96xbf16>
    %cst_12 = arith.constant dense<0.000000e+00> : vector<8x96xf32>
    %32 = tpu.matmul %30, %31, %cst_12 {dimension_numbers = #tpu.dot_dimension_numbers<[1], [0], [0], [1], [0, 0, 1, 1], [], []>} : vector<8x32xbf16>, vector<32x96xbf16>, vector<8x96xf32> -> vector<8x96xf32>
    %c0_13 = arith.constant 0 : index
    %c0_14 = arith.constant 0 : index
    %33 = vector.load %arg5[%c0_13, %c0_14] : memref<1x96xf32, #tpu.memory_space<vmem>>, vector<1x96xf32>
    %34 = vector.broadcast %33 : vector<1x96xf32> to vector<8x96xf32>
    %35 = arith.addf %32, %34 : vector<8x96xf32>
    %36 = arith.truncf %35 : vector<8x96xf32> to vector<8x96xbf16>
    %37 = vector.extract_strided_slice %36 {offsets = [0, 0], sizes = [8, 8], strides = [1, 1]} : vector<8x96xbf16> to vector<8x8xbf16>
    %c0_15 = arith.constant 0 : index
    %c0_16 = arith.constant 0 : index
    %c0_17 = arith.constant 0 : index
    %c0_18 = arith.constant 0 : index
    %38 = vector.load %arg6[%c0_15, %c0_16, %c0_17, %c0_18] : memref<1x4x8x8xbf16, #tpu.memory_space<vmem>>, vector<1x1x8x8xbf16>
    %39 = vector.shape_cast %38 : vector<1x1x8x8xbf16> to vector<8x8xbf16>
    %40 = vector.shape_cast %37 : vector<8x8xbf16> to vector<1x1x8x8xbf16>
    tpu.vector_store %arg6[%c0_15, %c0_16, %c0_17, %c0_18], %40 {strides = array<i32>} : memref<1x4x8x8xbf16, #tpu.memory_space<vmem>>, vector<1x1x8x8xbf16>,
    %41 = vector.extract_strided_slice %36 {offsets = [0, 32], sizes = [8, 8], strides = [1, 1]} : vector<8x96xbf16> to vector<8x8xbf16>
    %c0_19 = arith.constant 0 : index
    %c0_20 = arith.constant 0 : index
    %c0_21 = arith.constant 0 : index
    %c0_22 = arith.constant 0 : index
    %42 = vector.load %arg7[%c0_19, %c0_20, %c0_21, %c0_22] : memref<1x4x8x8xbf16, #tpu.memory_space<vmem>>, vector<1x1x8x8xbf16>
    %43 = vector.shape_cast %42 : vector<1x1x8x8xbf16> to vector<8x8xbf16>
    %44 = vector.shape_cast %41 : vector<8x8xbf16> to vector<1x1x8x8xbf16>
    tpu.vector_store %arg7[%c0_19, %c0_20, %c0_21, %c0_22], %44 {strides = array<i32>} : memref<1x4x8x8xbf16, #tpu.memory_space<vmem>>, vector<1x1x8x8xbf16>,
    %45 = vector.extract_strided_slice %36 {offsets = [0, 64], sizes = [8, 8], strides = [1, 1]} : vector<8x96xbf16> to vector<8x8xbf16>
    %c0_23 = arith.constant 0 : index
    %c0_24 = arith.constant 0 : index
    %c0_25 = arith.constant 0 : index
    %c0_26 = arith.constant 0 : index
    %46 = vector.load %arg8[%c0_23, %c0_24, %c0_25, %c0_26] : memref<1x4x8x8xbf16, #tpu.memory_space<vmem>>, vector<1x1x8x8xbf16>
    %47 = vector.shape_cast %46 : vector<1x1x8x8xbf16> to vector<8x8xbf16>
    %48 = vector.shape_cast %45 : vector<8x8xbf16> to vector<1x1x8x8xbf16>
    tpu.vector_store %arg8[%c0_23, %c0_24, %c0_25, %c0_26], %48 {strides = array<i32>} : memref<1x4x8x8xbf16, #tpu.memory_space<vmem>>, vector<1x1x8x8xbf16>,
    %49 = vector.extract_strided_slice %36 {offsets = [0, 8], sizes = [8, 8], strides = [1, 1]} : vector<8x96xbf16> to vector<8x8xbf16>
    %c0_27 = arith.constant 0 : index
    %c1 = arith.constant 1 : index
    %c0_28 = arith.constant 0 : index
    %c0_29 = arith.constant 0 : index
    %50 = vector.load %arg6[%c0_27, %c1, %c0_28, %c0_29] : memref<1x4x8x8xbf16, #tpu.memory_space<vmem>>, vector<1x1x8x8xbf16>
    %51 = vector.shape_cast %50 : vector<1x1x8x8xbf16> to vector<8x8xbf16>
    %52 = vector.shape_cast %49 : vector<8x8xbf16> to vector<1x1x8x8xbf16>
    tpu.vector_store %arg6[%c0_27, %c1, %c0_28, %c0_29], %52 {strides = array<i32>} : memref<1x4x8x8xbf16, #tpu.memory_space<vmem>>, vector<1x1x8x8xbf16>,
    %53 = vector.extract_strided_slice %36 {offsets = [0, 40], sizes = [8, 8], strides = [1, 1]} : vector<8x96xbf16> to vector<8x8xbf16>
    %c0_30 = arith.constant 0 : index
    %c1_31 = arith.constant 1 : index
    %c0_32 = arith.constant 0 : index
    %c0_33 = arith.constant 0 : index
    %54 = vector.load %arg7[%c0_30, %c1_31, %c0_32, %c0_33] : memref<1x4x8x8xbf16, #tpu.memory_space<vmem>>, vector<1x1x8x8xbf16>
    %55 = vector.shape_cast %54 : vector<1x1x8x8xbf16> to vector<8x8xbf16>
    %56 = vector.shape_cast %53 : vector<8x8xbf16> to vector<1x1x8x8xbf16>
    tpu.vector_store %arg7[%c0_30, %c1_31, %c0_32, %c0_33], %56 {strides = array<i32>} : memref<1x4x8x8xbf16, #tpu.memory_space<vmem>>, vector<1x1x8x8xbf16>,
    %57 = vector.extract_strided_slice %36 {offsets = [0, 72], sizes = [8, 8], strides = [1, 1]} : vector<8x96xbf16> to vector<8x8xbf16>
    %c0_34 = arith.constant 0 : index
    %c1_35 = arith.constant 1 : index
    %c0_36 = arith.constant 0 : index
    %c0_37 = arith.constant 0 : index
    %58 = vector.load %arg8[%c0_34, %c1_35, %c0_36, %c0_37] : memref<1x4x8x8xbf16, #tpu.memory_space<vmem>>, vector<1x1x8x8xbf16>
    %59 = vector.shape_cast %58 : vector<1x1x8x8xbf16> to vector<8x8xbf16>
    %60 = vector.shape_cast %57 : vector<8x8xbf16> to vector<1x1x8x8xbf16>
    tpu.vector_store %arg8[%c0_34, %c1_35, %c0_36, %c0_37], %60 {strides = array<i32>} : memref<1x4x8x8xbf16, #tpu.memory_space<vmem>>, vector<1x1x8x8xbf16>,
    %61 = vector.extract_strided_slice %36 {offsets = [0, 16], sizes = [8, 8], strides = [1, 1]} : vector<8x96xbf16> to vector<8x8xbf16>
    %c0_38 = arith.constant 0 : index
    %c2 = arith.constant 2 : index
    %c0_39 = arith.constant 0 : index
    %c0_40 = arith.constant 0 : index
    %62 = vector.load %arg6[%c0_38, %c2, %c0_39, %c0_40] : memref<1x4x8x8xbf16, #tpu.memory_space<vmem>>, vector<1x1x8x8xbf16>
    %63 = vector.shape_cast %62 : vector<1x1x8x8xbf16> to vector<8x8xbf16>
    %64 = vector.shape_cast %61 : vector<8x8xbf16> to vector<1x1x8x8xbf16>
    tpu.vector_store %arg6[%c0_38, %c2, %c0_39, %c0_40], %64 {strides = array<i32>} : memref<1x4x8x8xbf16, #tpu.memory_space<vmem>>, vector<1x1x8x8xbf16>,
    %65 = vector.extract_strided_slice %36 {offsets = [0, 48], sizes = [8, 8], strides = [1, 1]} : vector<8x96xbf16> to vector<8x8xbf16>
    %c0_41 = arith.constant 0 : index
    %c2_42 = arith.constant 2 : index
    %c0_43 = arith.constant 0 : index
    %c0_44 = arith.constant 0 : index
    %66 = vector.load %arg7[%c0_41, %c2_42, %c0_43, %c0_44] : memref<1x4x8x8xbf16, #tpu.memory_space<vmem>>, vector<1x1x8x8xbf16>
    %67 = vector.shape_cast %66 : vector<1x1x8x8xbf16> to vector<8x8xbf16>
    %68 = vector.shape_cast %65 : vector<8x8xbf16> to vector<1x1x8x8xbf16>
    tpu.vector_store %arg7[%c0_41, %c2_42, %c0_43, %c0_44], %68 {strides = array<i32>} : memref<1x4x8x8xbf16, #tpu.memory_space<vmem>>, vector<1x1x8x8xbf16>,
    %69 = vector.extract_strided_slice %36 {offsets = [0, 80], sizes = [8, 8], strides = [1, 1]} : vector<8x96xbf16> to vector<8x8xbf16>
    %c0_45 = arith.constant 0 : index
    %c2_46 = arith.constant 2 : index
    %c0_47 = arith.constant 0 : index
    %c0_48 = arith.constant 0 : index
    %70 = vector.load %arg8[%c0_45, %c2_46, %c0_47, %c0_48] : memref<1x4x8x8xbf16, #tpu.memory_space<vmem>>, vector<1x1x8x8xbf16>
    %71 = vector.shape_cast %70 : vector<1x1x8x8xbf16> to vector<8x8xbf16>
    %72 = vector.shape_cast %69 : vector<8x8xbf16> to vector<1x1x8x8xbf16>
    tpu.vector_store %arg8[%c0_45, %c2_46, %c0_47, %c0_48], %72 {strides = array<i32>} : memref<1x4x8x8xbf16, #tpu.memory_space<vmem>>, vector<1x1x8x8xbf16>,
    %73 = vector.extract_strided_slice %36 {offsets = [0, 24], sizes = [8, 8], strides = [1, 1]} : vector<8x96xbf16> to vector<8x8xbf16>
    %c0_49 = arith.constant 0 : index
    %c3 = arith.constant 3 : index
    %c0_50 = arith.constant 0 : index
    %c0_51 = arith.constant 0 : index
    %74 = vector.load %arg6[%c0_49, %c3, %c0_50, %c0_51] : memref<1x4x8x8xbf16, #tpu.memory_space<vmem>>, vector<1x1x8x8xbf16>
    %75 = vector.shape_cast %74 : vector<1x1x8x8xbf16> to vector<8x8xbf16>
    %76 = vector.shape_cast %73 : vector<8x8xbf16> to vector<1x1x8x8xbf16>
    tpu.vector_store %arg6[%c0_49, %c3, %c0_50, %c0_51], %76 {strides = array<i32>} : memref<1x4x8x8xbf16, #tpu.memory_space<vmem>>, vector<1x1x8x8xbf16>,
    %77 = vector.extract_strided_slice %36 {offsets = [0, 56], sizes = [8, 8], strides = [1, 1]} : vector<8x96xbf16> to vector<8x8xbf16>
    %c0_52 = arith.constant 0 : index
    %c3_53 = arith.constant 3 : index
    %c0_54 = arith.constant 0 : index
    %c0_55 = arith.constant 0 : index
    %78 = vector.load %arg7[%c0_52, %c3_53, %c0_54, %c0_55] : memref<1x4x8x8xbf16, #tpu.memory_space<vmem>>, vector<1x1x8x8xbf16>
    %79 = vector.shape_cast %78 : vector<1x1x8x8xbf16> to vector<8x8xbf16>
    %80 = vector.shape_cast %77 : vector<8x8xbf16> to vector<1x1x8x8xbf16>
    tpu.vector_store %arg7[%c0_52, %c3_53, %c0_54, %c0_55], %80 {strides = array<i32>} : memref<1x4x8x8xbf16, #tpu.memory_space<vmem>>, vector<1x1x8x8xbf16>,
    %81 = vector.extract_strided_slice %36 {offsets = [0, 88], sizes = [8, 8], strides = [1, 1]} : vector<8x96xbf16> to vector<8x8xbf16>
    %c0_56 = arith.constant 0 : index
    %c3_57 = arith.constant 3 : index
    %c0_58 = arith.constant 0 : index
    %c0_59 = arith.constant 0 : index
    %82 = vector.load %arg8[%c0_56, %c3_57, %c0_58, %c0_59] : memref<1x4x8x8xbf16, #tpu.memory_space<vmem>>, vector<1x1x8x8xbf16>
    %83 = vector.shape_cast %82 : vector<1x1x8x8xbf16> to vector<8x8xbf16>
    %84 = vector.shape_cast %81 : vector<8x8xbf16> to vector<1x1x8x8xbf16>
    tpu.vector_store %arg8[%c0_56, %c3_57, %c0_58, %c0_59], %84 {strides = array<i32>} : memref<1x4x8x8xbf16, #tpu.memory_space<vmem>>, vector<1x1x8x8xbf16>,
    return
  }
  func.func @transform_0(%arg0: i32, %arg1: i32) -> (i32, i32, i32) {
    %c0_i32 = arith.constant 0 : i32
    %c0_i32_0 = arith.constant 0 : i32
    return %arg0, %arg1, %c0_i32 : i32, i32, i32
  }
  func.func @transform_1(%arg0: i32, %arg1: i32) -> (i32, i32, i32) {
    %c0_i32 = arith.constant 0 : i32
    %c0_i32_0 = arith.constant 0 : i32
    %c0_i32_1 = arith.constant 0 : i32
    return %arg0, %c0_i32, %c0_i32_0 : i32, i32, i32
  }
  func.func @transform_2(%arg0: i32, %arg1: i32) -> (i32, i32) {
    %c0_i32 = arith.constant 0 : i32
    %c0_i32_0 = arith.constant 0 : i32
    %c0_i32_1 = arith.constant 0 : i32
    return %c0_i32, %c0_i32_0 : i32, i32
  }
  func.func @transform_3(%arg0: i32, %arg1: i32) -> (i32, i32) {
    %c0_i32 = arith.constant 0 : i32
    %c0_i32_0 = arith.constant 0 : i32
    %c0_i32_1 = arith.constant 0 : i32
    return %c0_i32, %c0_i32_0 : i32, i32
  }
  func.func @transform_4(%arg0: i32, %arg1: i32) -> (i32, i32, i32, i32) {
    %c0_i32 = arith.constant 0 : i32
    %c0_i32_0 = arith.constant 0 : i32
    %c0_i32_1 = arith.constant 0 : i32
    return %arg0, %c0_i32, %arg1, %c0_i32_0 : i32, i32, i32, i32
  }
  func.func @transform_5(%arg0: i32, %arg1: i32) -> (i32, i32, i32, i32) {
    %c0_i32 = arith.constant 0 : i32
    %c0_i32_0 = arith.constant 0 : i32
    %c0_i32_1 = arith.constant 0 : i32
    return %arg0, %c0_i32, %arg1, %c0_i32_0 : i32, i32, i32, i32
  }
  func.func @transform_6(%arg0: i32, %arg1: i32) -> (i32, i32, i32, i32) {
    %c0_i32 = arith.constant 0 : i32
    %c0_i32_0 = arith.constant 0 : i32
    %c0_i32_1 = arith.constant 0 : i32
    return %arg0, %c0_i32, %arg1, %c0_i32_0 : i32, i32, i32, i32
  }
}

</mosaic_0001>

<bundles_post_ra>
// kernel: tpu_custom_call.1
= control target key start
LH: loop header
LB: loop body
LE: loop exit
PB: predicated region body
PF: predicated region fallthrough
CT: control target
= control target key end

     0   :  { %s1598_s0 = inlined_call_operand.hbm [shape: f32[2,8,32], index: 0, kind: input, shape index: {}]   ;;  %s1599_s1 = inlined_call_operand.hbm [shape: f32[2,1,192], index: 1, kind: input, shape index: {}]   ;;  %s1600_s2 = inlined_call_operand.hbm [shape: bf16[32,96], index: 2, kind: input, shape index: {}]   ;;  %s1601_s3 = inlined_call_operand.vmem [shape: f32[1,96], index: 3, kind: input, shape index: {}]   ;;  %s1602_s4 = inlined_call_operand.hbm [shape: bf16[2,4,8,8], index: 4, kind: output, shape index: {0}]   ;;  %s1603_s5 = inlined_call_operand.hbm [shape: bf16[2,4,8,8], index: 5, kind: output, shape index: {1}]   ;;  %s1604_s6 = inlined_call_operand.hbm [shape: bf16[2,4,8,8], index: 6, kind: output, shape index: {2}]  }
   0x1   :  { %1611 = sst [smem:[#allocation19_spill]] %s1598_s0 }
   0x2   :  { %1612 = sst [smem:[#allocation20_spill]] %s1600_s2 }
   0x3   :  { %12 = vsyncpa [#allocation3], 0 }
   0x4   :  { %14 = vsyncpa [#allocation3 + $0x1], 0 }
   0x5   :  { %15 = vsyncpa [#allocation6], 0 }
   0x6   :  { %17 = vsyncpa [#allocation6 + $0x1], 0 }
   0x7   :  { %18 = vsyncpa [#allocation4], 0 }
   0x8   :  { %20 = vsyncpa [#allocation4 + $0x1], 0 }
   0x9   :  { %21 = vsyncpa [#allocation10], 0 }
   0xa   :  { %23 = vsyncpa [#allocation10 + $0x1], 0  ;;  %s1222_s21 = smov 0   ;;  %s1224_s22 = smov 0  }
   0xb   :  { %s1226_s23 = smov 0   ;;  %s1228_s24 = smov 0  }
   0xc   :  { %s1230_s25 = smov 0   ;;  %s1232_s26 = smov 0  }
   0xd LB: > { %s1253_s27 = sadd.s32 4294967295, %s1163_s26   ;;  %s1608_s28 = sadd.s32 4294967294, %s1163_s26   ;;  %s1163_s26 = sphi %s1232_s26, %s29_s26   ;;  %s1159_s25 = sphi %s1230_s25, %s1640_s25   ;;  %s1155_s24 = sphi %s1228_s24, %s1639_s24   ;;  %s1151_s23 = sphi %s1226_s23, %s1638_s23   ;;  %s1147_s22 = sphi %s1224_s22, %s1637_s22   ;;  %s1143_s21 = sphi %s1222_s21, %s1636_s21  }
   0xe   : > { %p63_p0 = scmp.ne.s32.totalorder %s1147_s22, %s1143_s21  ;;  %p1605_p1 = scmp.eq.s32.totalorder %s1253_s27, 0 }
   0xf   : > { %p163_p3 = scmp.eq.s32.totalorder %s1608_s28, 1  ;;  %p761_p5 = scmp.ge.s32.totalorder %s1163_s26, 1 }
  0x10   : > { %p1264_p4 = por %p1605_p1, %p63_p0  ;;  %p226_p7 = scmp.lt.s32.totalorder %s1163_s26, 3 }
  0x11   : > { %p1269_p6 = por %p163_p3, %p63_p0  ;;  %s1165_s8 = smov [#allocation7]  }
  0x12   : > { %s1613_s29 = scalar_select %p1264_p4, 1, 0 }
  0x13   : > { %s1614_s30 = scalar_select %p1269_p6, 1, 0 }
  0x14   : > { %p1274_p8 = pnand %p761_p5, %p226_p7  ;;  %s238_s9 = sshll.u32 %s1165_s8, 4  ;;  %s239_s9 = int_to_ptr.vmem [resolvable:$true] %s238_s9 }
  0x15   : > { %s41_s11 = sadd.s32 1, %s1159_s25  ;;  %s1617_s2 = sld [smem:[#allocation20_spill]] }
  0x16   : > { %s1615_s7 = scalar_select %p1274_p8, 1, 0 }
  0x17   : > { %p831_p9 = pneg %p1274_p8 }
  0x19   : > { %p1283_p11 = pnand %p831_p9, %p1605_p1 }
  0x1b   : > { %s925_s14 = scalar_lea.hbm %s1617_s2, 256  ;;  %p927_p13 = pneg %p1283_p11 }
  0x1c   : > { %p926_p12 = scmp.ne.s32.totalorder %s1617_s2, %s925_s14  ;;  %p932_p5 = scmp.lt.u32.totalorder %s925_s14, %s1617_s2 }
  0x1e   : > { %p928_p0 = pnand %p927_p13, %p926_p12 }
  0x20   : > { %p929_p3 = pneg %p928_p0 }
  0x22   : > { %p934_p7 = pnand %p932_p5, %p929_p3 }
  0x24   : > { %937 = shalt.err (!%p934_p7)
}
  0x25   : > { %s938_s19 = scalar_lea.vmem %s239_s9, 256  ;;  %p946_p2 = scmp.lt.s32.totalorder %s239_s9, %s239_s9 }
  0x26   : > { %p939_p9 = scmp.ne.s32.totalorder %s239_s9, %s938_s19  ;;  %p947_p6 = scmp.lt.s32.totalorder %s938_s19, %s938_s19 }
  0x28   : > { %p941_p10 = pnand %p939_p9, %p927_p13  ;;  %p948_p4 = por %p947_p6, %p946_p2 }
  0x2a   : > { %p942_p1 = pneg %p941_p10 }
  0x2c   : > { %p949_p8 = pnand %p948_p4, %p942_p1 }
  0x2e   : > { %952 = shalt.err (!%p949_p8)
}
  0x2f   : > { %s1166_s20 = smov 64   ;;  %s1167_s8 = smov 4  }
  0x30   : > { %834 = dma.hbm_to_vmem [thread:$0]  (!%p1283_p11), %s1617_s2, 256, %s239_s9, [#allocation6], %s1166_s20, %s1166_s20, %s1167_s8  }
  0x31   : > { %p43_p1 = scmp.ge.s32.totalorder %s41_s11, 2  ;;  %s50_s14 = sadd.s32 1, %s1151_s23 }
  0x32   : > { %p57_p2 = scmp.ne.s32.totalorder %s1151_s23, %s1147_s22  ;;  %p58_p4 = scmp.eq.s32.totalorder %s1163_s26, 0 }
  0x33   : > { %s1642_s11 = smov (%p43_p1, %s41_s11), 0  ;;  %p1620_p8 = scmp.eq.s32.totalorder %s1253_s27, 1 }
  0x34   : > { %1618 = sst [smem:[#allocation17_spill]] %s1642_s11  ;;  %p1310_p6 = por %p58_p4, %p57_p2 }
  0x35   : > { %p1316_p10 = por %p1620_p8, %p57_p2  ;;  %s45_s16 = ssub.s32 %s1159_s25, %s1642_s11 }
  0x36   : > { %p853_p11 = scmp.lt.s32.totalorder %s1163_s26, 2  ;;  %p48_p12 = scmp.eq.s32.totalorder %s45_s16, 0 }
  0x37   : > { %s1621_s10 = scalar_select %p1316_p10, 1, 0 }
  0x38   : > { %s1324_s9 = sand.u32 1, %s1151_s23   ;;  %s765_s19 = sshll.u32 %s1159_s25, 7 }
  0x39   : > { %s764_s17 = sshll.u32 %s1324_s9, 3  ;;  %s1623_s0 = sld [smem:[#allocation19_spill]] }
  0x3a   : > { %s1328_s18 = scalar_select %p48_p12, %s1151_s23, %s50_s14  }
  0x3b   : > { %s259_s13 = scalar_lea.vmem [#allocation2], %s764_s17  ;;  %p1340_p13 = pnand %p853_p11, %p1310_p6 }
  0x3c   : > { %1622 = sst [smem:[#allocation18_spill]] %s1328_s18  ;;  %s267_s16 = sshll.u32 %s259_s13, 4  ;;  %s1336_s16 = int_to_ptr.vmem [resolvable:$true] %s267_s16 }
  0x3d   : > { %s766_s2 = sshll.u32 %s1324_s9, 1  ;;  %s256_s20 = scalar_lea.sflag [#allocation3], %s1324_s9 }
  0x3e   : > { %p955_p3 = pneg %p1340_p13 }
  0x3f   : > { %s1334_s12 = scalar_lea.hbm %s1623_s0, %s765_s19  ;;  %s958_s15 = scalar_lea.hbm %s1623_s0, 256 }
  0x40   : > { %s953_s19 = scalar_lea.hbm %s1334_s12, 128  ;;  %p959_p9 = scmp.lt.u32.totalorder %s1334_s12, %s1623_s0 }
  0x41   : > { %p954_p0 = scmp.ne.s32.totalorder %s1334_s12, %s953_s19  ;;  %p960_p1 = scmp.lt.u32.totalorder %s958_s15, %s953_s19 }
  0x42   : > { %p962_p4 = scmp.lt.u32.totalorder %s953_s19, %s1334_s12 }
  0x43   : > { %p956_p5 = pnand %p955_p3, %p954_p0  ;;  %p961_p2 = por %p960_p1, %p959_p9 }
  0x45   : > { %p957_p7 = pneg %p956_p5  ;;  %p963_p6 = por %p962_p4, %p961_p2 }
  0x47   : > { %p964_p8 = pnand %p963_p6, %p957_p7 }
  0x49   : > { %967 = shalt.err (!%p964_p8)
}
  0x4a   : > { %s968_s14 = scalar_lea.vmem %s1336_s16, 128  ;;  %s1168_s17 = smov [#allocation2]  }
  0x4b   : > { %p969_p11 = scmp.ne.s32.totalorder %s1336_s16, %s968_s14  ;;  %s973_s8 = sshll.u32 %s1168_s17, 4  ;;  %s974_s8 = int_to_ptr.vmem [resolvable:$false] %s973_s8 }
  0x4c   : > { %s975_s11 = scalar_lea.vmem %s974_s8, 256  ;;  %p976_p5 = scmp.lt.s32.totalorder %s1336_s16, %s974_s8 }
  0x4d   : > { %p971_p12 = pnand %p969_p11, %p955_p3  ;;  %p977_p9 = scmp.lt.s32.totalorder %s975_s11, %s968_s14 }
  0x4f   : > { %p972_p0 = pneg %p971_p12  ;;  %p978_p1 = por %p977_p9, %p976_p5 }
  0x51   : > { %p979_p2 = pnand %p978_p1, %p972_p0 }
  0x53   : > { %982 = shalt.err (!%p979_p2)
}
  0x54   : > { %838 = dma.hbm_to_vmem [thread:$0]  (!%p1340_p13), %s1334_s12, 128, %s1336_s16, %s256_s20  }
  0x55   : > { %s801_s19 = sshll.u32 %s1159_s25, 5  ;;  %s278_s14 = scalar_lea.vmem [#allocation5], %s766_s2 }
  0x56   : > { %s1376_s17 = scalar_lea.hbm %s1599_s1, %s801_s19  ;;  %s286_s8 = sshll.u32 %s278_s14, 4  ;;  %s287_s8 = int_to_ptr.vmem [resolvable:$true] %s286_s8 }
  0x57   : > { %s1625_s11 = sand.u32 1, %s1163_s26   ;;  %s983_s18 = scalar_lea.hbm %s1376_s17, 32 }
  0x58   : > { %s275_s0 = scalar_lea.sflag [#allocation6], %s1625_s11  ;;  %p984_p7 = scmp.ne.s32.totalorder %s1376_s17, %s983_s18 }
  0x59   : > { %s988_s20 = scalar_lea.hbm %s1599_s1, 64  ;;  %p989_p8 = scmp.lt.u32.totalorder %s1376_s17, %s1599_s1 }
  0x5a   : > { %p986_p4 = pnand %p984_p7, %p955_p3  ;;  %p990_p11 = scmp.lt.u32.totalorder %s988_s20, %s983_s18 }
  0x5b   : > { %p992_p0 = scmp.lt.u32.totalorder %s983_s18, %s1376_s17 }
  0x5c   : > { %p987_p6 = pneg %p986_p4  ;;  %p991_p12 = por %p990_p11, %p989_p8 }
  0x5e   : > { %p993_p5 = por %p992_p0, %p991_p12 }
  0x60   : > { %p994_p9 = pnand %p993_p5, %p987_p6 }
  0x62   : > { %997 = shalt.err (!%p994_p9)
}
  0x63   : > { %s998_s2 = scalar_lea.vmem %s287_s8, 32  ;;  %s1169_s15 = smov [#allocation5]  }
  0x64   : > { %p999_p1 = scmp.ne.s32.totalorder %s287_s8, %s998_s2  ;;  %s1003_s13 = sshll.u32 %s1169_s15, 4  ;;  %s1004_s13 = int_to_ptr.vmem [resolvable:$false] %s1003_s13 }
  0x65   : > { %s1005_s14 = scalar_lea.vmem %s1004_s13, 64  ;;  %p1006_p4 = scmp.lt.s32.totalorder %s287_s8, %s1004_s13 }
  0x66   : > { %p1001_p2 = pnand %p999_p1, %p955_p3  ;;  %p1007_p10 = scmp.lt.s32.totalorder %s1005_s14, %s998_s2 }
  0x68   : > { %p1002_p7 = pneg %p1001_p2  ;;  %p1008_p8 = por %p1007_p10, %p1006_p4 }
  0x6a   : > { %p1009_p11 = pnand %p1008_p8, %p1002_p7 }
  0x6c   : > { %1012 = shalt.err (!%p1009_p11)
}
  0x6d   : > { %841 = dma.hbm_to_vmem [thread:$0]  (!%p1340_p13), %s1376_s17, 32, %s287_s8, %s275_s0  }
  0x6e   : > { %p1626_p6 = scmp.ne.s32.totalorder %s1615_s7, 0 }
  0x6f   : > { %s1404_s18 = sand.u32 (!%p1626_p6), 1, %s1147_s22   ;;  %p1627_p3 = scmp.ne.s32.totalorder (!%p1626_p6), %s1613_s29, 0 }
  0x70   : > { %295 = sbr.rel (%p1626_p6) target bundleno = 843 (0x34b), region = 36  ;;  %s770_s11 = sshll.u32 (!%p1626_p6), %s1404_s18, 3 }
  0x71   : > { %s298_s12 = scalar_lea.sflag (!%p1626_p6), [#allocation3], %s1404_s18  ;;  %s301_s16 = scalar_lea.vmem (!%p1626_p6), [#allocation2], %s770_s11 }
  0x77   : > { %1122 = dma.done.wait (%p1627_p3), %s298_s12, 128  }
  0x78   : > { %1124 = vsyncadd (%p1627_p3), %s298_s12, 4294967168  ;;  %s306_s0 = sand.u32 1, %s1253_s27   ;;  %s771_s28 = sshll.u32 %s1404_s18, 1 }
  0x79   : > { %s307_s7 = scalar_lea.sflag [#allocation6], %s306_s0  ;;  %s310_s17 = scalar_lea.vmem [#allocation5], %s771_s28 }
  0x7a   : > { %1126 = dma.done.wait (%p1627_p3), %s307_s7, 32  }
  0x7b   : > { %1128 = vsyncadd (%p1627_p3), %s307_s7, 4294967264  ;;  %p1628_p10 = scmp.eq.s32.totalorder %s1253_s27, 0 }
  0x7d   : > { %1130 = dma.done.wait (%p1628_p10), [#allocation6], 256   ;;  %p1629_p13 = pmov %p1628_p10 }
  0x7e   : > { %vm361_vm0 = vcmask 261120   ;;  %v359_v0 = vld [vmem:[%s301_s16] sm:$0xff]  ;;  %v360_v2 = vld [vmem:[%s310_s17] sm:$0x3]  ;;  %v378_v3 = vlaneseq  ;;  %s1170_s8 = smov 96   ;;  %v921_v13 = vld [vmem:[#allocation7] sm:$0xff]  }
  0x7f   : > { %1132 = vsyncadd (%p1629_p13), [#allocation6], 4294967040  ;;  %v362_v1 = vsel %vm361_vm0, %v359_v0, 0.0  ;;  %v376_v4 = vadd.f32 1.0, %v360_v2  ;;  %v1171_v14 = vmov 0.0   ;;  %v922_v15 = vld [vmem:[#allocation7 + $0x8] sm:$0xff]  }
  0x80   : > { %363 = vadd.xlane.f32.xlu0 %v362_v1  ;;  %v379_v5 = vshrl.u32 %v378_v3, 7  ;;  %809 = vmatprep.subr.bf16.mxu0 %v1171_v14  ;;  %vm1172_vm1 = vmmov 0   ;;  %v776_v26 = vld [vmem:[%s1601_s3] ss:$0 sm:$0xff]  ;;  %s1432_s9 = sshll.u32 %s1404_s18, 4  ;;  %vm461_vm2 = vcmask 60416  }
  0x81   : > { %810 = vmatpush3.bf16.msra.mxu0 %v921_v13  ;;  %813 = vmatprep.mubr.msk.bf16.mxu0 %vm1172_vm1, %v1171_v14  ;;  %s1173_s19 = smov 88   ;;  %s1436_s2 = scalar_lea.vmem [#allocation8], %s1432_s9 }
  0x82   : > { %v380_v6 = vsub.s32 0, %v379_v5  ;;  %811 = vmatprep.subr.bf16.mxu0 %v1171_v14  ;;  %s1174_s15 = smov 48   ;;  %s1175_s13 = smov 80  }
  0x83   : > { %s1176_s14 = smov 40   ;;  %s1177_s11 = smov 72  }
  0x84   : > { %v381_v7 = vrot.slane %v376_v4, %v380_v6  ;;  %v390_v21 = vrot.slane %v360_v2, %v380_v6  ;;  %s1178_s12 = smov 64   ;;  %s1179_s16 = smov 120  }
  0x85   : > { %812 = vmatpush3.bf16.msra.mxu0 %v922_v15  ;;  %s1180_s28 = smov 56   ;;  %s1181_s7 = smov 112  }
  0x86   : > { %382 = vrot.lane.b32.xlu1 %v381_v7, %s1170_s8  ;;  %s1182_s17 = smov 104   ;;  %s1445_s20 = sshll.u32 %s1155_s24, 8 }
  0x87   : > { %s1466_s24 = scalar_lea.sflag [#allocation10], %s306_s0  ;;  %p1630_p0 = scmp.ne.s32.totalorder %s1621_s10, 0 }
  0xf8   : > { %v383_v20 = vpop.permute.xlu1 %382 }
 0x10d   : > { %v364_v8 = vpop.xlane.xlu0 %363 }
 0x10e   : > { %v366_v9 = vmul.f32 0.03125, %v364_v8 }
 0x110   : > { %v367_v10 = vsub.f32 %v359_v0, %v366_v9 }
 0x112   : > { %v368_v11 = vmul.f32 %v367_v10, %v367_v10 }
 0x114   : > { %v369_v12 = vsel %vm361_vm0, %v368_v11, 0.0 }
 0x115   : > { %370 = vadd.xlane.f32.xlu0 %v369_v12 }
 0x1a2   : > { %v371_v16 = vpop.xlane.xlu0 %370 }
 0x1a3   : > { %v372_v17 = vmul.f32 0.03125, %v371_v16 }
 0x1a5   : > { %v373_v18 = vadd.f32 1e-06, %v372_v17 }
 0x1a7   : > { %923 = vrsqrt.f32 %v373_v18 }
 0x1b1   : > { %v924_v19 = vpop.eup %923 }
 0x1b2   : > { %v375_v22 = vmul.f32 %v924_v19, %v367_v10 }
 0x1b4   : > { %v385_v23 = vmul.f32 %v383_v20, %v375_v22 }
 0x1b6   : > { %v392_v24 = vadd.f32 %v390_v21, %v385_v23 }
 0x1b8   : > { %v393_v25 = vpack.c.bf16 %v392_v24, %v392_v24 }
 0x1ba   : > { %814 = vmatmul.mubr.msk.bf16.vlgmr.msra.gmra.mrb[0].mxu0 %vm361_vm0, %v393_v25 }
 0x28d   : > { %v454_v27 = vpop.f32.mrb[0].mxu0 }
 0x28e   : > { %v455_v28 = vadd.f32 %v776_v26, %v454_v27  ;;  %v815_v29 = vpop.f32.mrb[1].mxu0 }
 0x28f   : > { %v457_v30 = vpop.f32.mrb[2].mxu0 }
 0x290   : > { %v460_v31 = vpack.c.bf16 %v455_v28, %v455_v28  ;;  %v816_v32 = vpop.f32.mrb[3].mxu0 }
 0x292   : > { %479 = vrot.lane.b32.xlu0 %v460_v31, %s1173_s19  ;;  %466 = vrot.lane.b32.xlu1 %v460_v31, %s1170_s8  ;;  %462 = vst.msk [vmem:[%s1436_s2] sm:$0xf] %vm461_vm2, %v460_v31  ;;  %s350_s8 = scalar_lea.vmem [#allocation9], %s1432_s9  ;;  %s1448_s19 = scalar_lea.vmem [#allocation11], %s1432_s9 }
 0x293   : > { %s561_s29 = sshll.u32 %s350_s8, 4  ;;  %s1453_s29 = int_to_ptr.vmem [resolvable:$true] %s561_s29 }
 0x294   : > { %s1013_s9 = scalar_lea.vmem %s1453_s29, 256 }
 0x295   : > { %p1014_p12 = scmp.ne.s32.totalorder %s1453_s29, %s1013_s9 }
 0x296   : > { %499 = vrot.lane.b32.xlu0 %v460_v31, %s1174_s15  ;;  %494 = vrot.lane.b32.xlu1 %v460_v31, %s1175_s13 }
 0x297   : > { %p1015_p5 = pnand %p1014_p12, %p1630_p0 }
 0x299   : > { %p1016_p9 = pneg %p1015_p5 }
 0x29a   : > { %514 = vrot.lane.b32.xlu0 %v460_v31, %s1176_s14  ;;  %509 = vrot.lane.b32.xlu1 %v460_v31, %s1177_s11  ;;  %s1459_s14 = scalar_lea.hbm %s1603_s5, %s1445_s20  ;;  %s1183_s11 = smov [#allocation9]  }
 0x29e   : > { %470 = vrot.lane.b32.xlu1 %v460_v31, %s1178_s12 }
 0x2a2   : > { %474 = vrot.lane.b32.xlu1 %v460_v31, %s1179_s16  ;;  %s1017_s16 = sshll.u32 %s1183_s11, 4  ;;  %s1018_s16 = int_to_ptr.vmem [resolvable:$false] %s1017_s16 }
 0x2a3   : > { %p1020_p1 = scmp.lt.s32.totalorder %s1453_s29, %s1018_s16 }
 0x2a6   : > { %484 = vrot.lane.b32.xlu1 %v460_v31, %s1180_s28  ;;  %s1019_s28 = scalar_lea.vmem %s1018_s16, 512 }
 0x2a7   : > { %p1021_p2 = scmp.lt.s32.totalorder %s1019_s28, %s1013_s9 }
 0x2a9   : > { %p1022_p7 = por %p1021_p2, %p1020_p1 }
 0x2aa   : > { %489 = vrot.lane.b32.xlu1 %v460_v31, %s1181_s7 }
 0x2ab   : > { %p1023_p4 = pnand %p1022_p7, %p1016_p9 }
 0x2ae   : > { %504 = vrot.lane.b32.xlu1 %v460_v31, %s1182_s17 }
 0x304   : > { %v480_v33 = vpop.permute.xlu0 %479  ;;  %v467_v34 = vpop.permute.xlu1 %466 }
 0x305   : > { %782 = vst.msk [vmem:[%s350_s8 + $0x4] sm:$0xf] %vm461_vm2, %v480_v33  ;;  %469 = vst.msk [vmem:[%s350_s8] sm:$0xf] %vm461_vm2, %v467_v34 }
 0x308   : > { %v500_v35 = vpop.permute.xlu0 %499  ;;  %v495_v36 = vpop.permute.xlu1 %494 }
 0x309   : > { %786 = vst.msk [vmem:[%s1448_s19 + $0x8] sm:$0xf] %vm461_vm2, %v500_v35  ;;  %785 = vst.msk [vmem:[%s350_s8 + $0x8] sm:$0xf] %vm461_vm2, %v495_v36 }
 0x30c   : > { %v515_v37 = vpop.permute.xlu0 %514  ;;  %v510_v38 = vpop.permute.xlu1 %509 }
 0x30d   : > { %789 = vst.msk [vmem:[%s1448_s19 + $0xc] sm:$0xf] %vm461_vm2, %v515_v37  ;;  %788 = vst.msk [vmem:[%s350_s8 + $0xc] sm:$0xf] %vm461_vm2, %v510_v38 }
 0x30e   : > { %1026 = shalt.err (!%p1023_p4)
}
 0x30f   : > { %s1027_s27 = scalar_lea.hbm %s1459_s14, 256  ;;  %s1031_s17 = scalar_lea.hbm %s1603_s5, 512 }
 0x310   : > { %p1028_p8 = scmp.ne.s32.totalorder %s1459_s14, %s1027_s27  ;;  %p1032_p3 = scmp.lt.u32.totalorder %s1459_s14, %s1603_s5 }
 0x311   : > { %p1033_p10 = scmp.lt.u32.totalorder %s1031_s17, %s1027_s27  ;;  %p1035_p12 = scmp.lt.u32.totalorder %s1027_s27, %s1459_s14 }
 0x312   : > { %p1029_p11 = pnand %p1028_p8, %p1630_p0 }
 0x313   : > { %p1034_p13 = por %p1033_p10, %p1032_p3 }
 0x314   : > { %p1030_p6 = pneg %p1029_p11 }
 0x315   : > { %p1036_p5 = por %p1035_p12, %p1034_p13 }
 0x317   : > { %p1037_p9 = pnand %p1036_p5, %p1030_p6 }
 0x319   : > { %1040 = shalt.err (!%p1037_p9)
}
 0x31a   : > { %s1184_s13 = smov 4   ;;  %v471_v39 = vpop.permute.xlu1 %470  ;;  %s578_s9 = sshll.u32 %s1448_s19, 4  ;;  %s1498_s9 = int_to_ptr.vmem [resolvable:$true] %s578_s9 }
 0x31b   : > { %826 = dma.vmem_to_hbm [thread:$0]  (%p1630_p0), %s1453_s29, 256, %s1459_s14, %s1466_s24, %s1178_s12, %s1178_s12, %s1184_s13  }
 0x31c   : > { %473 = vst.msk [vmem:[%s1448_s19] sm:$0xf] %vm461_vm2, %v471_v39  ;;  %s1504_s28 = scalar_lea.hbm %s1604_s6, %s1445_s20  ;;  %s1041_s29 = scalar_lea.vmem %s1498_s9, 256 }
 0x31d   : > { %p1042_p1 = scmp.ne.s32.totalorder %s1498_s9, %s1041_s29  ;;  %s1185_s14 = smov [#allocation11]  }
 0x31e   : > { %v475_v40 = vpop.permute.xlu1 %474  ;;  %s1045_s27 = sshll.u32 %s1185_s14, 4  ;;  %s1046_s27 = int_to_ptr.vmem [resolvable:$false] %s1045_s27 }
 0x31f   : > { %781 = vst.msk [vmem:[%s1436_s2 + $0x4] sm:$0xf] %vm461_vm2, %v475_v40  ;;  %p1043_p2 = pnand %p1042_p1, %p1630_p0  ;;  %s1047_s0 = scalar_lea.vmem %s1046_s27, 512 }
 0x320   : > { %p1048_p4 = scmp.lt.s32.totalorder %s1498_s9, %s1046_s27  ;;  %p1049_p8 = scmp.lt.s32.totalorder %s1047_s0, %s1041_s29 }
 0x321   : > { %p1044_p7 = pneg %p1043_p2 }
 0x322   : > { %v485_v41 = vpop.permute.xlu1 %484  ;;  %p1050_p11 = por %p1049_p8, %p1048_p4 }
 0x323   : > { %783 = vst.msk [vmem:[%s1448_s19 + $0x4] sm:$0xf] %vm461_vm2, %v485_v41 }
 0x324   : > { %p1051_p6 = pnand %p1050_p11, %p1044_p7 }
 0x326   : > { %1054 = shalt.err (!%p1051_p6)
}
 0x327   : > { %s1055_s19 = scalar_lea.hbm %s1504_s28, 256  ;;  %s1059_s8 = scalar_lea.hbm %s1604_s6, 512 }
 0x328   : > { %p1056_p3 = scmp.ne.s32.totalorder %s1504_s28, %s1055_s19  ;;  %p1060_p12 = scmp.lt.u32.totalorder %s1504_s28, %s1604_s6 }
 0x329   : > { %p1061_p5 = scmp.lt.u32.totalorder %s1059_s8, %s1055_s19  ;;  %p1063_p1 = scmp.lt.u32.totalorder %s1055_s19, %s1504_s28 }
 0x32a   : > { %p1057_p10 = pnand %p1056_p3, %p1630_p0 }
 0x32b   : > { %p1062_p9 = por %p1061_p5, %p1060_p12 }
 0x32c   : > { %p1058_p13 = pneg %p1057_p10 }
 0x32d   : > { %p1064_p2 = por %p1063_p1, %p1062_p9 }
 0x32f   : > { %p1065_p7 = pnand %p1064_p2, %p1058_p13 }
 0x331   : > { %1068 = shalt.err (!%p1065_p7)
}
 0x332   : > { %827 = dma.vmem_to_hbm [thread:$0]  (%p1630_p0), %s1498_s9, 256, %s1504_s28, %s1466_s24, %s1178_s12, %s1178_s12, %s1184_s13   ;;  %v490_v42 = vpop.permute.xlu1 %489 }
 0x333   : > { %s544_s16 = sshll.u32 %s1436_s2, 4  ;;  %784 = vst.msk [vmem:[%s1436_s2 + $0x8] sm:$0xf] %vm461_vm2, %v490_v42  ;;  %s1542_s27 = scalar_lea.hbm %s1602_s4, %s1445_s20  ;;  %s1536_s16 = int_to_ptr.vmem [resolvable:$true] %s544_s16 }
 0x334   : > { %s520_s0 = scalar_lea.sflag [#allocation4], %s1404_s18  ;;  %s1069_s19 = scalar_lea.vmem %s1536_s16, 256 }
 0x335   : > { %p1070_p4 = scmp.ne.s32.totalorder %s1536_s16, %s1069_s19  ;;  %s1186_s24 = smov [#allocation8]  }
 0x336   : > { %v505_v43 = vpop.permute.xlu1 %504  ;;  %s1073_s9 = sshll.u32 %s1186_s24, 4  ;;  %s1074_s9 = int_to_ptr.vmem [resolvable:$false] %s1073_s9 }
 0x337   : > { %787 = vst.msk [vmem:[%s1436_s2 + $0xc] sm:$0xf] %vm461_vm2, %v505_v43  ;;  %p1071_p8 = pnand %p1070_p4, %p1630_p0  ;;  %s1075_s28 = scalar_lea.vmem %s1074_s9, 512 }
 0x338   : > { %p1076_p6 = scmp.lt.s32.totalorder %s1536_s16, %s1074_s9  ;;  %p1077_p3 = scmp.lt.s32.totalorder %s1075_s28, %s1069_s19 }
 0x339   : > { %p1072_p11 = pneg %p1071_p8 }
 0x33a   : > { %p1078_p10 = por %p1077_p3, %p1076_p6 }
 0x33c   : > { %p1079_p13 = pnand %p1078_p10, %p1072_p11 }
 0x33e   : > { %1082 = shalt.err (!%p1079_p13)
}
 0x33f   : > { %s1083_s2 = scalar_lea.hbm %s1542_s27, 256  ;;  %s1087_s17 = scalar_lea.hbm %s1602_s4, 512 }
 0x340   : > { %p1084_p12 = scmp.ne.s32.totalorder %s1542_s27, %s1083_s2  ;;  %p1088_p1 = scmp.lt.u32.totalorder %s1542_s27, %s1602_s4 }
 0x341   : > { %p1089_p2 = scmp.lt.u32.totalorder %s1087_s17, %s1083_s2  ;;  %p1091_p4 = scmp.lt.u32.totalorder %s1083_s2, %s1542_s27 }
 0x342   : > { %p1085_p5 = pnand %p1084_p12, %p1630_p0 }
 0x343   : > { %p1090_p7 = por %p1089_p2, %p1088_p1 }
 0x344   : > { %p1086_p9 = pneg %p1085_p5 }
 0x345   : > { %p1092_p8 = por %p1091_p4, %p1090_p7 }
 0x347   : > { %p1093_p11 = pnand %p1092_p8, %p1086_p9 }
 0x349   : > { %1096 = shalt.err (!%p1093_p11)
}
 0x34a   : > { %825 = dma.vmem_to_hbm [thread:$0]  (%p1630_p0), %s1536_s16, 256, %s1542_s27, %s520_s0, %s1178_s12, %s1178_s12, %s1184_s13  }
 0x34b PF: > { %s593_s11 = sand.u32 1, %s1143_s21   ;;  %p1631_p6 = scmp.ne.s32.totalorder %s1614_s30, 0 }
 0x34c   : > { %p1632_p3 = scmp.ge.s32.totalorder %s1163_s26, 2  ;;  %s594_s29 = scalar_lea.sflag [#allocation4], %s593_s11 }
 0x34e   : > { %p843_p10 = pnand %p1632_p3, %p1631_p6 }
 0x350   : > { %1134 = dma.done.wait (!%p843_p10), %s594_s29, 256  }
 0x351   : > { %1136 = vsyncadd (!%p843_p10), %s594_s29, 4294967040  ;;  %s1633_s10 = sadd.s32 4294967294, %s1163_s26  }
 0x352   : > { %s602_s14 = sand.u32 1, %s1633_s10  }
 0x353   : > { %s603_s19 = scalar_lea.sflag [#allocation10], %s602_s14 }
 0x354   : > { %1138 = dma.done.wait (!%p843_p10), %s603_s19, 512  }
 0x355   : > { %1140 = vsyncadd (!%p843_p10), %s603_s19, 4294966784  ;;  %s29_s26 = sadd.s32 1, %s1163_s26   ;;  %s1634_s18 = sld [smem:[#allocation18_spill]] }
 0x356   : > { %p26_p0 = scmp.ge.s32.totalorder %s29_s26, 4   ;;  %s1635_s12 = sld [smem:[#allocation17_spill]] }
 0x357   : > { %s1636_s21 = smov %s1147_s22  ;;  %s1637_s22 = smov %s1151_s23 }
 0x358   : > { %s1639_s24 = smov %s1159_s25  ;;  %28 = sbr.rel (!%p26_p0) target bundleno = 13 (0xd), region = 139 }
 0x35b   : > { %s1638_s23 = smov %s1634_s18 }
 0x35c   : > { %s1640_s25 = smov %s1635_s12 }
 0x35f   :  { %617 = vsyncpa [#allocation3], 1 }
 0x360   :  { %619 = vsyncpa [#allocation3 + $0x1], 1 }
 0x361   :  { %620 = vsyncpa [#allocation6], 1 }
 0x362   :  { %622 = vsyncpa [#allocation6 + $0x1], 1 }
 0x363   :  { %623 = vsyncpa [#allocation4], 1 }
 0x364   :  { %625 = vsyncpa [#allocation4 + $0x1], 1 }
 0x365   :  { %626 = vsyncpa [#allocation10], 1 }
 0x366   :  { %628 = vsyncpa [#allocation10 + $0x1], 1 }

// kernel: tpu_custom_call.1
= control target key start
LH: loop header
LB: loop body
LE: loop exit
PB: predicated region body
PF: predicated region fallthrough
CT: control target
= control target key end

     0   :  { %s1598_s0 = inlined_call_operand.hbm [shape: f32[2,8,32], index: 0, kind: input, shape index: {}]   ;;  %s1599_s1 = inlined_call_operand.hbm [shape: f32[2,1,192], index: 1, kind: input, shape index: {}]   ;;  %s1600_s2 = inlined_call_operand.hbm [shape: bf16[32,96], index: 2, kind: input, shape index: {}]   ;;  %s1601_s3 = inlined_call_operand.vmem [shape: f32[1,96], index: 3, kind: input, shape index: {}]   ;;  %s1602_s4 = inlined_call_operand.hbm [shape: bf16[2,4,8,8], index: 4, kind: output, shape index: {0}]   ;;  %s1603_s5 = inlined_call_operand.hbm [shape: bf16[2,4,8,8], index: 5, kind: output, shape index: {1}]   ;;  %s1604_s6 = inlined_call_operand.hbm [shape: bf16[2,4,8,8], index: 6, kind: output, shape index: {2}]  }
   0x1   :  { %1611 = sst [smem:[#allocation19_spill]] %s1598_s0 }
   0x2   :  { %1612 = sst [smem:[#allocation20_spill]] %s1600_s2 }
   0x3   :  { %12 = vsyncpa [#allocation3], 0 }
   0x4   :  { %14 = vsyncpa [#allocation3 + $0x1], 0 }
   0x5   :  { %15 = vsyncpa [#allocation6], 0 }
   0x6   :  { %17 = vsyncpa [#allocation6 + $0x1], 0 }
   0x7   :  { %18 = vsyncpa [#allocation4], 0 }
   0x8   :  { %20 = vsyncpa [#allocation4 + $0x1], 0 }
   0x9   :  { %21 = vsyncpa [#allocation10], 0 }
   0xa   :  { %23 = vsyncpa [#allocation10 + $0x1], 0  ;;  %s1222_s21 = smov 0   ;;  %s1224_s22 = smov 0  }
   0xb   :  { %s1226_s23 = smov 0   ;;  %s1228_s24 = smov 0  }
   0xc   :  { %s1230_s25 = smov 0   ;;  %s1232_s26 = smov 0  }
   0xd LB: > { %s1253_s27 = sadd.s32 4294967295, %s1163_s26   ;;  %s1608_s28 = sadd.s32 4294967294, %s1163_s26   ;;  %s1163_s26 = sphi %s1232_s26, %s29_s26   ;;  %s1159_s25 = sphi %s1230_s25, %s1640_s25   ;;  %s1155_s24 = sphi %s1228_s24, %s1639_s24   ;;  %s1151_s23 = sphi %s1226_s23, %s1638_s23   ;;  %s1147_s22 = sphi %s1224_s22, %s1637_s22   ;;  %s1143_s21 = sphi %s1222_s21, %s1636_s21  }
   0xe   : > { %p63_p0 = scmp.ne.s32.totalorder %s1147_s22, %s1143_s21  ;;  %p1605_p1 = scmp.eq.s32.totalorder %s1253_s27, 0 }
   0xf   : > { %p163_p3 = scmp.eq.s32.totalorder %s1608_s28, 1  ;;  %p761_p5 = scmp.ge.s32.totalorder %s1163_s26, 1 }
  0x10   : > { %p1264_p4 = por %p1605_p1, %p63_p0  ;;  %p226_p7 = scmp.lt.s32.totalorder %s1163_s26, 3 }
  0x11   : > { %p1269_p6 = por %p163_p3, %p63_p0  ;;  %s1165_s8 = smov [#allocation7]  }
  0x12   : > { %s1613_s29 = scalar_select %p1264_p4, 1, 0 }
  0x13   : > { %s1614_s30 = scalar_select %p1269_p6, 1, 0 }
  0x14   : > { %p1274_p8 = pnand %p761_p5, %p226_p7  ;;  %s238_s9 = sshll.u32 %s1165_s8, 4  ;;  %s239_s9 = int_to_ptr.vmem [resolvable:$true] %s238_s9 }
  0x15   : > { %s41_s11 = sadd.s32 1, %s1159_s25  ;;  %s1617_s2 = sld [smem:[#allocation20_spill]] }
  0x16   : > { %s1615_s7 = scalar_select %p1274_p8, 1, 0 }
  0x17   : > { %p831_p9 = pneg %p1274_p8 }
  0x19   : > { %p1283_p11 = pnand %p831_p9, %p1605_p1 }
  0x1b   : > { %s925_s14 = scalar_lea.hbm %s1617_s2, 256  ;;  %p927_p13 = pneg %p1283_p11 }
  0x1c   : > { %p926_p12 = scmp.ne.s32.totalorder %s1617_s2, %s925_s14  ;;  %p932_p5 = scmp.lt.u32.totalorder %s925_s14, %s1617_s2 }
  0x1e   : > { %p928_p0 = pnand %p927_p13, %p926_p12 }
  0x20   : > { %p929_p3 = pneg %p928_p0 }
  0x22   : > { %p934_p7 = pnand %p932_p5, %p929_p3 }
  0x24   : > { %937 = shalt.err (!%p934_p7)
}
  0x25   : > { %s938_s19 = scalar_lea.vmem %s239_s9, 256  ;;  %p946_p2 = scmp.lt.s32.totalorder %s239_s9, %s239_s9 }
  0x26   : > { %p939_p9 = scmp.ne.s32.totalorder %s239_s9, %s938_s19  ;;  %p947_p6 = scmp.lt.s32.totalorder %s938_s19, %s938_s19 }
  0x28   : > { %p941_p10 = pnand %p939_p9, %p927_p13  ;;  %p948_p4 = por %p947_p6, %p946_p2 }
  0x2a   : > { %p942_p1 = pneg %p941_p10 }
  0x2c   : > { %p949_p8 = pnand %p948_p4, %p942_p1 }
  0x2e   : > { %952 = shalt.err (!%p949_p8)
}
  0x2f   : > { %s1166_s20 = smov 64   ;;  %s1167_s8 = smov 4  }
  0x30   : > { %834 = dma.hbm_to_vmem [thread:$0]  (!%p1283_p11), %s1617_s2, 256, %s239_s9, [#allocation6], %s1166_s20, %s1166_s20, %s1167_s8  }
  0x31   : > { %p43_p1 = scmp.ge.s32.totalorder %s41_s11, 2  ;;  %s50_s14 = sadd.s32 1, %s1151_s23 }
  0x32   : > { %p57_p2 = scmp.ne.s32.totalorder %s1151_s23, %s1147_s22  ;;  %p58_p4 = scmp.eq.s32.totalorder %s1163_s26, 0 }
  0x33   : > { %s1642_s11 = smov (%p43_p1, %s41_s11), 0  ;;  %p1620_p8 = scmp.eq.s32.totalorder %s1253_s27, 1 }
  0x34   : > { %1618 = sst [smem:[#allocation17_spill]] %s1642_s11  ;;  %p1310_p6 = por %p58_p4, %p57_p2 }
  0x35   : > { %p1316_p10 = por %p1620_p8, %p57_p2  ;;  %s45_s16 = ssub.s32 %s1159_s25, %s1642_s11 }
  0x36   : > { %p853_p11 = scmp.lt.s32.totalorder %s1163_s26, 2  ;;  %p48_p12 = scmp.eq.s32.totalorder %s45_s16, 0 }
  0x37   : > { %s1621_s10 = scalar_select %p1316_p10, 1, 0 }
  0x38   : > { %s1324_s9 = sand.u32 1, %s1151_s23   ;;  %s765_s19 = sshll.u32 %s1159_s25, 7 }
  0x39   : > { %s764_s17 = sshll.u32 %s1324_s9, 3  ;;  %s1623_s0 = sld [smem:[#allocation19_spill]] }
  0x3a   : > { %s1328_s18 = scalar_select %p48_p12, %s1151_s23, %s50_s14  }
  0x3b   : > { %s259_s13 = scalar_lea.vmem [#allocation2], %s764_s17  ;;  %p1340_p13 = pnand %p853_p11, %p1310_p6 }
  0x3c   : > { %1622 = sst [smem:[#allocation18_spill]] %s1328_s18  ;;  %s267_s16 = sshll.u32 %s259_s13, 4  ;;  %s1336_s16 = int_to_ptr.vmem [resolvable:$true] %s267_s16 }
  0x3d   : > { %s766_s2 = sshll.u32 %s1324_s9, 1  ;;  %s256_s20 = scalar_lea.sflag [#allocation3], %s1324_s9 }
  0x3e   : > { %p955_p3 = pneg %p1340_p13 }
  0x3f   : > { %s1334_s12 = scalar_lea.hbm %s1623_s0, %s765_s19  ;;  %s958_s15 = scalar_lea.hbm %s1623_s0, 256 }
  0x40   : > { %s953_s19 = scalar_lea.hbm %s1334_s12, 128  ;;  %p959_p9 = scmp.lt.u32.totalorder %s1334_s12, %s1623_s0 }
  0x41   : > { %p954_p0 = scmp.ne.s32.totalorder %s1334_s12, %s953_s19  ;;  %p960_p1 = scmp.lt.u32.totalorder %s958_s15, %s953_s19 }
  0x42   : > { %p962_p4 = scmp.lt.u32.totalorder %s953_s19, %s1334_s12 }
  0x43   : > { %p956_p5 = pnand %p955_p3, %p954_p0  ;;  %p961_p2 = por %p960_p1, %p959_p9 }
  0x45   : > { %p957_p7 = pneg %p956_p5  ;;  %p963_p6 = por %p962_p4, %p961_p2 }
  0x47   : > { %p964_p8 = pnand %p963_p6, %p957_p7 }
  0x49   : > { %967 = shalt.err (!%p964_p8)
}
  0x4a   : > { %s968_s14 = scalar_lea.vmem %s1336_s16, 128  ;;  %s1168_s17 = smov [#allocation2]  }
  0x4b   : > { %p969_p11 = scmp.ne.s32.totalorder %s1336_s16, %s968_s14  ;;  %s973_s8 = sshll.u32 %s1168_s17, 4  ;;  %s974_s8 = int_to_ptr.vmem [resolvable:$false] %s973_s8 }
  0x4c   : > { %s975_s11 = scalar_lea.vmem %s974_s8, 256  ;;  %p976_p5 = scmp.lt.s32.totalorder %s1336_s16, %s974_s8 }
  0x4d   : > { %p971_p12 = pnand %p969_p11, %p955_p3  ;;  %p977_p9 = scmp.lt.s32.totalorder %s975_s11, %s968_s14 }
  0x4f   : > { %p972_p0 = pneg %p971_p12  ;;  %p978_p1 = por %p977_p9, %p976_p5 }
  0x51   : > { %p979_p2 = pnand %p978_p1, %p972_p0 }
  0x53   : > { %982 = shalt.err (!%p979_p2)
}
  0x54   : > { %838 = dma.hbm_to_vmem [thread:$0]  (!%p1340_p13), %s1334_s12, 128, %s1336_s16, %s256_s20  }
  0x55   : > { %s801_s19 = sshll.u32 %s1159_s25, 5  ;;  %s278_s14 = scalar_lea.vmem [#allocation5], %s766_s2 }
  0x56   : > { %s1376_s17 = scalar_lea.hbm %s1599_s1, %s801_s19  ;;  %s286_s8 = sshll.u32 %s278_s14, 4  ;;  %s287_s8 = int_to_ptr.vmem [resolvable:$true] %s286_s8 }
  0x57   : > { %s1625_s11 = sand.u32 1, %s1163_s26   ;;  %s983_s18 = scalar_lea.hbm %s1376_s17, 32 }
  0x58   : > { %s275_s0 = scalar_lea.sflag [#allocation6], %s1625_s11  ;;  %p984_p7 = scmp.ne.s32.totalorder %s1376_s17, %s983_s18 }
  0x59   : > { %s988_s20 = scalar_lea.hbm %s1599_s1, 64  ;;  %p989_p8 = scmp.lt.u32.totalorder %s1376_s17, %s1599_s1 }
  0x5a   : > { %p986_p4 = pnand %p984_p7, %p955_p3  ;;  %p990_p11 = scmp.lt.u32.totalorder %s988_s20, %s983_s18 }
  0x5b   : > { %p992_p0 = scmp.lt.u32.totalorder %s983_s18, %s1376_s17 }
  0x5c   : > { %p987_p6 = pneg %p986_p4  ;;  %p991_p12 = por %p990_p11, %p989_p8 }
  0x5e   : > { %p993_p5 = por %p992_p0, %p991_p12 }
  0x60   : > { %p994_p9 = pnand %p993_p5, %p987_p6 }
  0x62   : > { %997 = shalt.err (!%p994_p9)
}
  0x63   : > { %s998_s2 = scalar_lea.vmem %s287_s8, 32  ;;  %s1169_s15 = smov [#allocation5]  }
  0x64   : > { %p999_p1 = scmp.ne.s32.totalorder %s287_s8, %s998_s2  ;;  %s1003_s13 = sshll.u32 %s1169_s15, 4  ;;  %s1004_s13 = int_to_ptr.vmem [resolvable:$false] %s1003_s13 }
  0x65   : > { %s1005_s14 = scalar_lea.vmem %s1004_s13, 64  ;;  %p1006_p4 = scmp.lt.s32.totalorder %s287_s8, %s1004_s13 }
  0x66   : > { %p1001_p2 = pnand %p999_p1, %p955_p3  ;;  %p1007_p10 = scmp.lt.s32.totalorder %s1005_s14, %s998_s2 }
  0x68   : > { %p1002_p7 = pneg %p1001_p2  ;;  %p1008_p8 = por %p1007_p10, %p1006_p4 }
  0x6a   : > { %p1009_p11 = pnand %p1008_p8, %p1002_p7 }
  0x6c   : > { %1012 = shalt.err (!%p1009_p11)
}
  0x6d   : > { %841 = dma.hbm_to_vmem [thread:$0]  (!%p1340_p13), %s1376_s17, 32, %s287_s8, %s275_s0  }
  0x6e   : > { %p1626_p6 = scmp.ne.s32.totalorder %s1615_s7, 0 }
  0x6f   : > { %s1404_s18 = sand.u32 (!%p1626_p6), 1, %s1147_s22   ;;  %p1627_p3 = scmp.ne.s32.totalorder (!%p1626_p6), %s1613_s29, 0 }
  0x70   : > { %295 = sbr.rel (%p1626_p6) target bundleno = 843 (0x34b), region = 36  ;;  %s770_s11 = sshll.u32 (!%p1626_p6), %s1404_s18, 3 }
  0x71   : > { %s298_s12 = scalar_lea.sflag (!%p1626_p6), [#allocation3], %s1404_s18  ;;  %s301_s16 = scalar_lea.vmem (!%p1626_p6), [#allocation2], %s770_s11 }
  0x77   : > { %1122 = dma.done.wait (%p1627_p3), %s298_s12, 128  }
  0x78   : > { %1124 = vsyncadd (%p1627_p3), %s298_s12, 4294967168  ;;  %s306_s0 = sand.u32 1, %s1253_s27   ;;  %s771_s28 = sshll.u32 %s1404_s18, 1 }
  0x79   : > { %s307_s7 = scalar_lea.sflag [#allocation6], %s306_s0  ;;  %s310_s17 = scalar_lea.vmem [#allocation5], %s771_s28 }
  0x7a   : > { %1126 = dma.done.wait (%p1627_p3), %s307_s7, 32  }
  0x7b   : > { %1128 = vsyncadd (%p1627_p3), %s307_s7, 4294967264  ;;  %p1628_p10 = scmp.eq.s32.totalorder %s1253_s27, 0 }
  0x7d   : > { %1130 = dma.done.wait (%p1628_p10), [#allocation6], 256   ;;  %p1629_p13 = pmov %p1628_p10 }
  0x7e   : > { %vm361_vm0 = vcmask 261120   ;;  %v359_v0 = vld [vmem:[%s301_s16] sm:$0xff]  ;;  %v360_v2 = vld [vmem:[%s310_s17] sm:$0x3]  ;;  %v378_v3 = vlaneseq  ;;  %s1170_s8 = smov 96   ;;  %v921_v13 = vld [vmem:[#allocation7] sm:$0xff]  }
  0x7f   : > { %1132 = vsyncadd (%p1629_p13), [#allocation6], 4294967040  ;;  %v362_v1 = vsel %vm361_vm0, %v359_v0, 0.0  ;;  %v376_v4 = vadd.f32 1.0, %v360_v2  ;;  %v1171_v14 = vmov 0.0   ;;  %v922_v15 = vld [vmem:[#allocation7 + $0x8] sm:$0xff]  }
  0x80   : > { %363 = vadd.xlane.f32.xlu0 %v362_v1  ;;  %v379_v5 = vshrl.u32 %v378_v3, 7  ;;  %809 = vmatprep.subr.bf16.mxu0 %v1171_v14  ;;  %vm1172_vm1 = vmmov 0   ;;  %v776_v26 = vld [vmem:[%s1601_s3] ss:$0 sm:$0xff]  ;;  %s1432_s9 = sshll.u32 %s1404_s18, 4  ;;  %vm461_vm2 = vcmask 60416  }
  0x81   : > { %810 = vmatpush3.bf16.msra.mxu0 %v921_v13  ;;  %813 = vmatprep.mubr.msk.bf16.mxu0 %vm1172_vm1, %v1171_v14  ;;  %s1173_s19 = smov 88   ;;  %s1436_s2 = scalar_lea.vmem [#allocation8], %s1432_s9 }
  0x82   : > { %v380_v6 = vsub.s32 0, %v379_v5  ;;  %811 = vmatprep.subr.bf16.mxu0 %v1171_v14  ;;  %s1174_s15 = smov 48   ;;  %s1175_s13 = smov 80  }
  0x83   : > { %s1176_s14 = smov 40   ;;  %s1177_s11 = smov 72  }
  0x84   : > { %v381_v7 = vrot.slane %v376_v4, %v380_v6  ;;  %v390_v21 = vrot.slane %v360_v2, %v380_v6  ;;  %s1178_s12 = smov 64   ;;  %s1179_s16 = smov 120  }
  0x85   : > { %812 = vmatpush3.bf16.msra.mxu0 %v922_v15  ;;  %s1180_s28 = smov 56   ;;  %s1181_s7 = smov 112  }
  0x86   : > { %382 = vrot.lane.b32.xlu1 %v381_v7, %s1170_s8  ;;  %s1182_s17 = smov 104   ;;  %s1445_s20 = sshll.u32 %s1155_s24, 8 }
  0x87   : > { %s1466_s24 = scalar_lea.sflag [#allocation10], %s306_s0  ;;  %p1630_p0 = scmp.ne.s32.totalorder %s1621_s10, 0 }
  0xf8   : > { %v383_v20 = vpop.permute.xlu1 %382 }
 0x10d   : > { %v364_v8 = vpop.xlane.xlu0 %363 }
 0x10e   : > { %v366_v9 = vmul.f32 0.03125, %v364_v8 }
 0x110   : > { %v367_v10 = vsub.f32 %v359_v0, %v366_v9 }
 0x112   : > { %v368_v11 = vmul.f32 %v367_v10, %v367_v10 }
 0x114   : > { %v369_v12 = vsel %vm361_vm0, %v368_v11, 0.0 }
 0x115   : > { %370 = vadd.xlane.f32.xlu0 %v369_v12 }
 0x1a2   : > { %v371_v16 = vpop.xlane.xlu0 %370 }
 0x1a3   : > { %v372_v17 = vmul.f32 0.03125, %v371_v16 }
 0x1a5   : > { %v373_v18 = vadd.f32 1e-06, %v372_v17 }
 0x1a7   : > { %923 = vrsqrt.f32 %v373_v18 }
 0x1b1   : > { %v924_v19 = vpop.eup %923 }
 0x1b2   : > { %v375_v22 = vmul.f32 %v924_v19, %v367_v10 }
 0x1b4   : > { %v385_v23 = vmul.f32 %v383_v20, %v375_v22 }
 0x1b6   : > { %v392_v24 = vadd.f32 %v390_v21, %v385_v23 }
 0x1b8   : > { %v393_v25 = vpack.c.bf16 %v392_v24, %v392_v24 }
 0x1ba   : > { %814 = vmatmul.mubr.msk.bf16.vlgmr.msra.gmra.mrb[0].mxu0 %vm361_vm0, %v393_v25 }
 0x28d   : > { %v454_v27 = vpop.f32.mrb[0].mxu0 }
 0x28e   : > { %v455_v28 = vadd.f32 %v776_v26, %v454_v27  ;;  %v815_v29 = vpop.f32.mrb[1].mxu0 }
 0x28f   : > { %v457_v30 = vpop.f32.mrb[2].mxu0 }
 0x290   : > { %v460_v31 = vpack.c.bf16 %v455_v28, %v455_v28  ;;  %v816_v32 = vpop.f32.mrb[3].mxu0 }
 0x292   : > { %479 = vrot.lane.b32.xlu0 %v460_v31, %s1173_s19  ;;  %466 = vrot.lane.b32.xlu1 %v460_v31, %s1170_s8  ;;  %462 = vst.msk [vmem:[%s1436_s2] sm:$0xf] %vm461_vm2, %v460_v31  ;;  %s350_s8 = scalar_lea.vmem [#allocation9], %s1432_s9  ;;  %s1448_s19 = scalar_lea.vmem [#allocation11], %s1432_s9 }
 0x293   : > { %s561_s29 = sshll.u32 %s350_s8, 4  ;;  %s1453_s29 = int_to_ptr.vmem [resolvable:$true] %s561_s29 }
 0x294   : > { %s1013_s9 = scalar_lea.vmem %s1453_s29, 256 }
 0x295   : > { %p1014_p12 = scmp.ne.s32.totalorder %s1453_s29, %s1013_s9 }
 0x296   : > { %499 = vrot.lane.b32.xlu0 %v460_v31, %s1174_s15  ;;  %494 = vrot.lane.b32.xlu1 %v460_v31, %s1175_s13 }
 0x297   : > { %p1015_p5 = pnand %p1014_p12, %p1630_p0 }
 0x299   : > { %p1016_p9 = pneg %p1015_p5 }
 0x29a   : > { %514 = vrot.lane.b32.xlu0 %v460_v31, %s1176_s14  ;;  %509 = vrot.lane.b32.xlu1 %v460_v31, %s1177_s11  ;;  %s1459_s14 = scalar_lea.hbm %s1603_s5, %s1445_s20  ;;  %s1183_s11 = smov [#allocation9]  }
 0x29e   : > { %470 = vrot.lane.b32.xlu1 %v460_v31, %s1178_s12 }
 0x2a2   : > { %474 = vrot.lane.b32.xlu1 %v460_v31, %s1179_s16  ;;  %s1017_s16 = sshll.u32 %s1183_s11, 4  ;;  %s1018_s16 = int_to_ptr.vmem [resolvable:$false] %s1017_s16 }
 0x2a3   : > { %p1020_p1 = scmp.lt.s32.totalorder %s1453_s29, %s1018_s16 }
 0x2a6   : > { %484 = vrot.lane.b32.xlu1 %v460_v31, %s1180_s28  ;;  %s1019_s28 = scalar_lea.vmem %s1018_s16, 512 }
 0x2a7   : > { %p1021_p2 = scmp.lt.s32.totalorder %s1019_s28, %s1013_s9 }
 0x2a9   : > { %p1022_p7 = por %p1021_p2, %p1020_p1 }
 0x2aa   : > { %489 = vrot.lane.b32.xlu1 %v460_v31, %s1181_s7 }
 0x2ab   : > { %p1023_p4 = pnand %p1022_p7, %p1016_p9 }
 0x2ae   : > { %504 = vrot.lane.b32.xlu1 %v460_v31, %s1182_s17 }
 0x304   : > { %v480_v33 = vpop.permute.xlu0 %479  ;;  %v467_v34 = vpop.permute.xlu1 %466 }
 0x305   : > { %782 = vst.msk [vmem:[%s350_s8 + $0x4] sm:$0xf] %vm461_vm2, %v480_v33  ;;  %469 = vst.msk [vmem:[%s350_s8] sm:$0xf] %vm461_vm2, %v467_v34 }
 0x308   : > { %v500_v35 = vpop.permute.xlu0 %499  ;;  %v495_v36 = vpop.permute.xlu1 %494 }
 0x309   : > { %786 = vst.msk [vmem:[%s1448_s19 + $0x8] sm:$0xf] %vm461_vm2, %v500_v35  ;;  %785 = vst.msk [vmem:[%s350_s8 + $0x8] sm:$0xf] %vm461_vm2, %v495_v36 }
 0x30c   : > { %v515_v37 = vpop.permute.xlu0 %514  ;;  %v510_v38 = vpop.permute.xlu1 %509 }
 0x30d   : > { %789 = vst.msk [vmem:[%s1448_s19 + $0xc] sm:$0xf] %vm461_vm2, %v515_v37  ;;  %788 = vst.msk [vmem:[%s350_s8 + $0xc] sm:$0xf] %vm461_vm2, %v510_v38 }
 0x30e   : > { %1026 = shalt.err (!%p1023_p4)
}
 0x30f   : > { %s1027_s27 = scalar_lea.hbm %s1459_s14, 256  ;;  %s1031_s17 = scalar_lea.hbm %s1603_s5, 512 }
 0x310   : > { %p1028_p8 = scmp.ne.s32.totalorder %s1459_s14, %s1027_s27  ;;  %p1032_p3 = scmp.lt.u32.totalorder %s1459_s14, %s1603_s5 }
 0x311   : > { %p1033_p10 = scmp.lt.u32.totalorder %s1031_s17, %s1027_s27  ;;  %p1035_p12 = scmp.lt.u32.totalorder %s1027_s27, %s1459_s14 }
 0x312   : > { %p1029_p11 = pnand %p1028_p8, %p1630_p0 }
 0x313   : > { %p1034_p13 = por %p1033_p10, %p1032_p3 }
 0x314   : > { %p1030_p6 = pneg %p1029_p11 }
 0x315   : > { %p1036_p5 = por %p1035_p12, %p1034_p13 }
 0x317   : > { %p1037_p9 = pnand %p1036_p5, %p1030_p6 }
 0x319   : > { %1040 = shalt.err (!%p1037_p9)
}
 0x31a   : > { %s1184_s13 = smov 4   ;;  %v471_v39 = vpop.permute.xlu1 %470  ;;  %s578_s9 = sshll.u32 %s1448_s19, 4  ;;  %s1498_s9 = int_to_ptr.vmem [resolvable:$true] %s578_s9 }
 0x31b   : > { %826 = dma.vmem_to_hbm [thread:$0]  (%p1630_p0), %s1453_s29, 256, %s1459_s14, %s1466_s24, %s1178_s12, %s1178_s12, %s1184_s13  }
 0x31c   : > { %473 = vst.msk [vmem:[%s1448_s19] sm:$0xf] %vm461_vm2, %v471_v39  ;;  %s1504_s28 = scalar_lea.hbm %s1604_s6, %s1445_s20  ;;  %s1041_s29 = scalar_lea.vmem %s1498_s9, 256 }
 0x31d   : > { %p1042_p1 = scmp.ne.s32.totalorder %s1498_s9, %s1041_s29  ;;  %s1185_s14 = smov [#allocation11]  }
 0x31e   : > { %v475_v40 = vpop.permute.xlu1 %474  ;;  %s1045_s27 = sshll.u32 %s1185_s14, 4  ;;  %s1046_s27 = int_to_ptr.vmem [resolvable:$false] %s1045_s27 }
 0x31f   : > { %781 = vst.msk [vmem:[%s1436_s2 + $0x4] sm:$0xf] %vm461_vm2, %v475_v40  ;;  %p1043_p2 = pnand %p1042_p1, %p1630_p0  ;;  %s1047_s0 = scalar_lea.vmem %s1046_s27, 512 }
 0x320   : > { %p1048_p4 = scmp.lt.s32.totalorder %s1498_s9, %s1046_s27  ;;  %p1049_p8 = scmp.lt.s32.totalorder %s1047_s0, %s1041_s29 }
 0x321   : > { %p1044_p7 = pneg %p1043_p2 }
 0x322   : > { %v485_v41 = vpop.permute.xlu1 %484  ;;  %p1050_p11 = por %p1049_p8, %p1048_p4 }
 0x323   : > { %783 = vst.msk [vmem:[%s1448_s19 + $0x4] sm:$0xf] %vm461_vm2, %v485_v41 }
 0x324   : > { %p1051_p6 = pnand %p1050_p11, %p1044_p7 }
 0x326   : > { %1054 = shalt.err (!%p1051_p6)
}
 0x327   : > { %s1055_s19 = scalar_lea.hbm %s1504_s28, 256  ;;  %s1059_s8 = scalar_lea.hbm %s1604_s6, 512 }
 0x328   : > { %p1056_p3 = scmp.ne.s32.totalorder %s1504_s28, %s1055_s19  ;;  %p1060_p12 = scmp.lt.u32.totalorder %s1504_s28, %s1604_s6 }
 0x329   : > { %p1061_p5 = scmp.lt.u32.totalorder %s1059_s8, %s1055_s19  ;;  %p1063_p1 = scmp.lt.u32.totalorder %s1055_s19, %s1504_s28 }
 0x32a   : > { %p1057_p10 = pnand %p1056_p3, %p1630_p0 }
 0x32b   : > { %p1062_p9 = por %p1061_p5, %p1060_p12 }
 0x32c   : > { %p1058_p13 = pneg %p1057_p10 }
 0x32d   : > { %p1064_p2 = por %p1063_p1, %p1062_p9 }
 0x32f   : > { %p1065_p7 = pnand %p1064_p2, %p1058_p13 }
 0x331   : > { %1068 = shalt.err (!%p1065_p7)
}
 0x332   : > { %827 = dma.vmem_to_hbm [thread:$0]  (%p1630_p0), %s1498_s9, 256, %s1504_s28, %s1466_s24, %s1178_s12, %s1178_s12, %s1184_s13   ;;  %v490_v42 = vpop.permute.xlu1 %489 }
 0x333   : > { %s544_s16 = sshll.u32 %s1436_s2, 4  ;;  %784 = vst.msk [vmem:[%s1436_s2 + $0x8] sm:$0xf] %vm461_vm2, %v490_v42  ;;  %s1542_s27 = scalar_lea.hbm %s1602_s4, %s1445_s20  ;;  %s1536_s16 = int_to_ptr.vmem [resolvable:$true] %s544_s16 }
 0x334   : > { %s520_s0 = scalar_lea.sflag [#allocation4], %s1404_s18  ;;  %s1069_s19 = scalar_lea.vmem %s1536_s16, 256 }
 0x335   : > { %p1070_p4 = scmp.ne.s32.totalorder %s1536_s16, %s1069_s19  ;;  %s1186_s24 = smov [#allocation8]  }
 0x336   : > { %v505_v43 = vpop.permute.xlu1 %504  ;;  %s1073_s9 = sshll.u32 %s1186_s24, 4  ;;  %s1074_s9 = int_to_ptr.vmem [resolvable:$false] %s1073_s9 }
 0x337   : > { %787 = vst.msk [vmem:[%s1436_s2 + $0xc] sm:$0xf] %vm461_vm2, %v505_v43  ;;  %p1071_p8 = pnand %p1070_p4, %p1630_p0  ;;  %s1075_s28 = scalar_lea.vmem %s1074_s9, 512 }
 0x338   : > { %p1076_p6 = scmp.lt.s32.totalorder %s1536_s16, %s1074_s9  ;;  %p1077_p3 = scmp.lt.s32.totalorder %s1075_s28, %s1069_s19 }
 0x339   : > { %p1072_p11 = pneg %p1071_p8 }
 0x33a   : > { %p1078_p10 = por %p1077_p3, %p1076_p6 }
 0x33c   : > { %p1079_p13 = pnand %p1078_p10, %p1072_p11 }
 0x33e   : > { %1082 = shalt.err (!%p1079_p13)
}
 0x33f   : > { %s1083_s2 = scalar_lea.hbm %s1542_s27, 256  ;;  %s1087_s17 = scalar_lea.hbm %s1602_s4, 512 }
 0x340   : > { %p1084_p12 = scmp.ne.s32.totalorder %s1542_s27, %s1083_s2  ;;  %p1088_p1 = scmp.lt.u32.totalorder %s1542_s27, %s1602_s4 }
 0x341   : > { %p1089_p2 = scmp.lt.u32.totalorder %s1087_s17, %s1083_s2  ;;  %p1091_p4 = scmp.lt.u32.totalorder %s1083_s2, %s1542_s27 }
 0x342   : > { %p1085_p5 = pnand %p1084_p12, %p1630_p0 }
 0x343   : > { %p1090_p7 = por %p1089_p2, %p1088_p1 }
 0x344   : > { %p1086_p9 = pneg %p1085_p5 }
 0x345   : > { %p1092_p8 = por %p1091_p4, %p1090_p7 }
 0x347   : > { %p1093_p11 = pnand %p1092_p8, %p1086_p9 }
 0x349   : > { %1096 = shalt.err (!%p1093_p11)
}
 0x34a   : > { %825 = dma.vmem_to_hbm [thread:$0]  (%p1630_p0), %s1536_s16, 256, %s1542_s27, %s520_s0, %s1178_s12, %s1178_s12, %s1184_s13  }
 0x34b PF: > { %s593_s11 = sand.u32 1, %s1143_s21   ;;  %p1631_p6 = scmp.ne.s32.totalorder %s1614_s30, 0 }
 0x34c   : > { %p1632_p3 = scmp.ge.s32.totalorder %s1163_s26, 2  ;;  %s594_s29 = scalar_lea.sflag [#allocation4], %s593_s11 }
 0x34e   : > { %p843_p10 = pnand %p1632_p3, %p1631_p6 }
 0x350   : > { %1134 = dma.done.wait (!%p843_p10), %s594_s29, 256  }
 0x351   : > { %1136 = vsyncadd (!%p843_p10), %s594_s29, 4294967040  ;;  %s1633_s10 = sadd.s32 4294967294, %s1163_s26  }
 0x352   : > { %s602_s14 = sand.u32 1, %s1633_s10  }
 0x353   : > { %s603_s19 = scalar_lea.sflag [#allocation10], %s602_s14 }
 0x354   : > { %1138 = dma.done.wait (!%p843_p10), %s603_s19, 512  }
 0x355   : > { %1140 = vsyncadd (!%p843_p10), %s603_s19, 4294966784  ;;  %s29_s26 = sadd.s32 1, %s1163_s26   ;;  %s1634_s18 = sld [smem:[#allocation18_spill]] }
 0x356   : > { %p26_p0 = scmp.ge.s32.totalorder %s29_s26, 4   ;;  %s1635_s12 = sld [smem:[#allocation17_spill]] }
 0x357   : > { %s1636_s21 = smov %s1147_s22  ;;  %s1637_s22 = smov %s1151_s23 }
 0x358   : > { %s1639_s24 = smov %s1159_s25  ;;  %28 = sbr.rel (!%p26_p0) target bundleno = 13 (0xd), region = 139 }
 0x35b   : > { %s1638_s23 = smov %s1634_s18 }
 0x35c   : > { %s1640_s25 = smov %s1635_s12 }
 0x35f   :  { %617 = vsyncpa [#allocation3], 1 }
 0x360   :  { %619 = vsyncpa [#allocation3 + $0x1], 1 }
 0x361   :  { %620 = vsyncpa [#allocation6], 1 }
 0x362   :  { %622 = vsyncpa [#allocation6 + $0x1], 1 }
 0x363   :  { %623 = vsyncpa [#allocation4], 1 }
 0x364   :  { %625 = vsyncpa [#allocation4 + $0x1], 1 }
 0x365   :  { %626 = vsyncpa [#allocation10], 1 }
 0x366   :  { %628 = vsyncpa [#allocation10 + $0x1], 1 }

</bundles_post_ra>
